<compile_context>
chip_gen: v5e
topology: v5e:2x2
jax: 0.10.0
libtpu: 0.0.40
codegen_flags: <defaults>
</compile_context>

<pallas_src>
import functools

import jax
import jax.numpy as jnp
from jax.experimental import pallas as pl
from jax.experimental.pallas import tpu as pltpu

LANE = 128
VMEM_LIMIT = 48 * 1024 * 1024  # explicit budget (v7x only has 64 MiB VMEM)


def _round_up(x, m):
    return (x + m - 1) // m * m


def _cpad(c):
    return _round_up(c, LANE)


def conv_geometry(cfg, L):
    g = {}
    g['l1_out'] = L + 2 * cfg['CNN1padding'] - cfg['CNN1filterSize'] + 1
    g['lp1'] = g['l1_out'] // cfg['CNN1poolSize']
    g['l2_in'] = g['lp1'] + 2 * cfg['CNN2padding']
    g['l2_out'] = g['l2_in'] - cfg['CNN2filterSize'] + 1
    g['l3_in'] = g['l2_out'] + 2 * cfg['CNN3padding']
    g['l3_out'] = g['l3_in'] - cfg['CNN3filterSize'] + 1
    g['lp3'] = g['l3_out'] // cfg['CNN3poolSize']
    return g


# ---------------------------------------------------------------------------
# Fused conv stack kernel (conv+BN+ReLU[+pool]) x3, one batch tile per step
# ---------------------------------------------------------------------------
def _maxpool_pool(h2d, b, l, pool):
    """h2d: (b*l, c) -> (b, l//pool, c); floor pooling strictly within a sample."""
    c = h2d.shape[-1]
    lp = l // pool
    if pool == 1:
        return h2d.reshape(b, l, c)
    if l % pool == 0:
        # sample boundaries coincide with pool-window boundaries: pool on the
        # merged rows (relayout-friendly 3-D reshape).
        return jnp.max(h2d.reshape(b * lp, pool, c), axis=1).reshape(b, lp, c)
    # general case: drop each sample's trailing l % pool rows before pooling
    h = h2d.reshape(b, l, c)[:, :lp * pool, :].reshape(b, lp, pool, c)
    return jnp.max(h, axis=2)


def _conv_stack_kernel(x1_ref, w1_ref, s1_ref, w2_ref, s2_ref, w3_ref, s3_ref,
                       o_ref, a1_ref, a2_ref, *,
                       B, kd1, K2, K3, c1p, c2p, c3p,
                       l1_out, pool1, pad2, l2_out, pad3, l3_out, pool3):
    f32 = jnp.float32

    # ---- layer 1: Conv(Cin=4) as ONE matmul over merged taps, + BN + ReLU + pool
    x1 = x1_ref[...].reshape(B * l1_out, kd1)
    h = jnp.dot(x1, w1_ref[...], preferred_element_type=f32)      # (B*l1, c1p)
    h = jnp.maximum(h + s1_ref[...], 0.0)
    h = _maxpool_pool(h, B, l1_out, pool1)                        # (B, lp1, c1p)
    lp1 = l1_out // pool1

    # stash into VMEM scratch with the layer-2 halo; halo rows are zero
    a1_ref[...] = jnp.zeros_like(a1_ref)
    a1_ref[:, pad2:pad2 + lp1, :] = h

    # ---- layer 2: K2 shifted matmuls on the VMEM-resident activation
    acc = jnp.zeros((B * l2_out, c2p), f32)
    for k in range(K2):
        lhs = a1_ref[:, k:k + l2_out, :].reshape(B * l2_out, c1p)
        acc = acc + jnp.dot(lhs, w2_ref[k * c1p:(k + 1) * c1p, :],
                            preferred_element_type=f32)
    h = jnp.maximum(acc + s2_ref[...], 0.0).reshape(B, l2_out, c2p)

    a2_ref[...] = jnp.zeros_like(a2_ref)
    a2_ref[:, pad3:pad3 + l2_out, :] = h

    # ---- layer 3: K3 shifted matmuls + BN + ReLU + pool
    acc = jnp.zeros((B * l3_out, c3p), f32)
    for k in range(K3):
        lhs = a2_ref[:, k:k + l3_out, :].reshape(B * l3_out, c2p)
        acc = acc + jnp.dot(lhs, w3_ref[k * c2p:(k + 1) * c2p, :],
                            preferred_element_type=f32)
    h = jnp.maximum(acc + s3_ref[...], 0.0)
    o_ref[...] = _maxpool_pool(h, B, l3_out, pool3).astype(o_ref.dtype)


def conv_stack(x1, w1, s1, w2, s2, w3, s3, cfg, geom, b_tile):
    n_pad, l1_out, kd1 = x1.shape
    c1p, c2p, c3p = w1.shape[1], w2.shape[1], w3.shape[1]
    K2, K3 = cfg['CNN2filterSize'], cfg['CNN3filterSize']
    lp3 = geom['lp3']

    kernel = functools.partial(
        _conv_stack_kernel, B=b_tile, kd1=kd1, K2=K2, K3=K3,
        c1p=c1p, c2p=c2p, c3p=c3p,
        l1_out=l1_out, pool1=cfg['CNN1poolSize'],
        pad2=cfg['CNN2padding'], l2_out=geom['l2_out'],
        pad3=cfg['CNN3padding'], l3_out=geom['l3_out'],
        pool3=cfg['CNN3poolSize'])

    c1, c2, c3 = cfg['CNN1filters'], cfg['CNN2filters'], cfg['CNN3filters']
    cost = pl.CostEstimate(   # true (unpadded) FLOPs
        flops=2 * n_pad * (l1_out * kd1 * c1
                           + geom['l2_out'] * K2 * c1 * c2
                           + geom['l3_out'] * K3 * c2 * c3),
        transcendentals=0,
        bytes_accessed=4 * (x1.size + w1.size + w2.size + w3.size
                            + n_pad * lp3 * c3p))

    return pl.pallas_call(
        kernel,
        out_shape=jax.ShapeDtypeStruct((n_pad, lp3, c3p), jnp.float32),
        grid=(n_pad // b_tile,),
        in_specs=[
            pl.BlockSpec((b_tile, l1_out, kd1), lambda n: (n, 0, 0)),
            pl.BlockSpec((kd1, c1p), lambda n: (0, 0)),          # resident
            pl.BlockSpec((1, c1p), lambda n: (0, 0)),            # resident
            pl.BlockSpec((K2 * c1p, c2p), lambda n: (0, 0)),     # resident
            pl.BlockSpec((1, c2p), lambda n: (0, 0)),            # resident
            pl.BlockSpec((K3 * c2p, c3p), lambda n: (0, 0)),     # resident
            pl.BlockSpec((1, c3p), lambda n: (0, 0)),            # resident
        ],
        out_specs=pl.BlockSpec((b_tile, lp3, c3p), lambda n: (n, 0, 0)),
        scratch_shapes=[
            pltpu.VMEM((b_tile, geom['l2_in'], c1p), jnp.float32),  # act1 + halo
            pltpu.VMEM((b_tile, geom['l3_in'], c2p), jnp.float32),  # act2 + halo
        ],
        compiler_params=pltpu.CompilerParams(
            dimension_semantics=("parallel",),
            vmem_limit_bytes=VMEM_LIMIT),
        cost_estimate=cost,
    )(x1, w1, s1, w2, s2, w3, s3)


# ---------------------------------------------------------------------------
# Fused MLP kernel (fc1+ReLU -> fc2+ReLU -> fc3), tiled over batch rows
# ---------------------------------------------------------------------------
def _mlp_kernel(x_ref, w1_ref, b1_ref, w2_ref, b2_ref, w3_ref, b3_ref, o_ref):
    h = jnp.dot(x_ref[...], w1_ref[...], preferred_element_type=jnp.float32)
    h = jnp.maximum(h + b1_ref[...], 0.0)
    h = jnp.dot(h, w2_ref[...], preferred_element_type=jnp.float32)
    h = jnp.maximum(h + b2_ref[...], 0.0)
    h = jnp.dot(h, w3_ref[...], preferred_element_type=jnp.float32)
    o_ref[...] = (h + b3_ref[...]).astype(o_ref.dtype)


def fused_mlp(x_flat, w1, b1, w2, b2, w3, b3, rows):
    n, fin = x_flat.shape
    f1, f2, f3 = w1.shape[1], w2.shape[1], w3.shape[1]
    cost = pl.CostEstimate(
        flops=2 * n * (fin * f1 + f1 * f2 + f2 * f3),
        transcendentals=0,
        bytes_accessed=4 * (x_flat.size + w1.size + w2.size + w3.size + n * f3))
    return pl.pallas_call(
        _mlp_kernel,
        out_shape=jax.ShapeDtypeStruct((n, f3), jnp.float32),
        grid=(n // rows,),
        in_specs=[
            pl.BlockSpec((rows, fin), lambda i: (i, 0)),
            pl.BlockSpec((fin, f1), lambda i: (0, 0)),
            pl.BlockSpec((1, f1), lambda i: (0, 0)),
            pl.BlockSpec((f1, f2), lambda i: (0, 0)),
            pl.BlockSpec((1, f2), lambda i: (0, 0)),
            pl.BlockSpec((f2, f3), lambda i: (0, 0)),
            pl.BlockSpec((1, f3), lambda i: (0, 0)),
        ],
        out_specs=pl.BlockSpec((rows, f3), lambda i: (i, 0)),
        compiler_params=pltpu.CompilerParams(
            dimension_semantics=("parallel",),
            vmem_limit_bytes=VMEM_LIMIT),
        cost_estimate=cost,
    )(x_flat, w1, b1, w2, b2, w3, b3)


# ---------------------------------------------------------------------------
# One-time parameter preparation (hoisted out of the forward path)
# ---------------------------------------------------------------------------
def prep_conv(w, gamma, beta, mean, var, cin_pad, cout_pad, eps=1e-5):
    """PyTorch conv weight (Cout, Cin, K) + BN stats -> folded, padded matrix
    w_mat[k*cin_pad+ci, co] = w[co,ci,k]*scale[co] and shift (1, cout_pad)."""
    cout, cin, K = w.shape
    scale = gamma / jnp.sqrt(var + eps)
    shift = beta - mean * scale
    wk = jnp.transpose(w, (2, 1, 0)) * scale[None, None, :]       # (K, Cin, Cout)
    wk = jnp.pad(wk, ((0, 0), (0, cin_pad - cin), (0, cout_pad - cout)))
    return wk.reshape(K * cin_pad, cout_pad), jnp.pad(shift, (0, cout_pad - cout))[None, :]


def prep_fc1(w, b, c3, c3p, l3p, out_pad):
    """fc1 weight columns (PyTorch NCW-flatten order c*l3p+l) re-ordered/padded
    to the kernel's channel-last flatten order (l*c3p+c)."""
    o, fin = w.shape
    assert fin == c3 * l3p
    wr = jnp.transpose(w.reshape(o, c3, l3p), (2, 1, 0))          # (L, C, O)
    wr = jnp.pad(wr, ((0, 0), (0, c3p - c3), (0, out_pad - o)))
    return wr.reshape(l3p * c3p, out_pad), jnp.pad(b, (0, out_pad - o))[None, :]


def prep_fc(w, b, in_pad, out_pad):
    o, i = w.shape
    wp = jnp.pad(w.T, ((0, in_pad - i), (0, out_pad - o)))
    return wp, jnp.pad(b, (0, out_pad - o))[None, :]


def prepare_basset_params(p, cfg, L):
    geom = conv_geometry(cfg, L)
    c1, c2, c3 = cfg['CNN1filters'], cfg['CNN2filters'], cfg['CNN3filters']
    c1p, c2p, c3p = _cpad(c1), _cpad(c2), _cpad(c3)
    f1p = _cpad(cfg['FC1outputSize'])
    f2p = _cpad(cfg['FC2outputSize'])
    f3p = _cpad(cfg['numClasses'])

    w1, s1 = prep_conv(p['w1'], p['bn1_gamma'], p['bn1_beta'], p['bn1_mean'],
                       p['bn1_var'], cin_pad=4, cout_pad=c1p)   # Cin=4 left narrow
    w2, s2 = prep_conv(p['w2'], p['bn2_gamma'], p['bn2_beta'], p['bn2_mean'],
                       p['bn2_var'], cin_pad=c1p, cout_pad=c2p)
    w3, s3 = prep_conv(p['w3'], p['bn3_gamma'], p['bn3_beta'], p['bn3_mean'],
                       p['bn3_var'], cin_pad=c2p, cout_pad=c3p)
    fc1w, fc1b = prep_fc1(p['fc1_w'], p['fc1_b'], c3, c3p, geom['lp3'], f1p)
    fc2w, fc2b = prep_fc(p['fc2_w'], p['fc2_b'], f1p, f2p)
    fc3w, fc3b = prep_fc(p['fc3_w'], p['fc3_b'], f2p, f3p)
    return dict(w1=w1, s1=s1, w2=w2, s2=s2, w3=w3, s3=s3,
                fc1w=fc1w, fc1b=fc1b, fc2w=fc2w, fc2b=fc2b,
                fc3w=fc3w, fc3b=fc3b)


# ---------------------------------------------------------------------------
# Forward pass
# ---------------------------------------------------------------------------
def basset_forward(x, prep, cfg, b_tile):
    """x: (N, 4, L) NCW float32 -> (N, numClasses). Dropout = identity (eval)."""
    N, cin, L = x.shape
    geom = conv_geometry(cfg, L)
    K1, pad1 = cfg['CNN1filterSize'], cfg['CNN1padding']
    l1_out = geom['l1_out']

    n_pad = _round_up(N, b_tile)
    # channel-last + conv length pad; batch padded to the grid tile
    xc = jnp.transpose(x, (0, 2, 1))                              # (N, L, 4)
    xc = jnp.pad(xc, ((0, n_pad - N), (pad1, pad1), (0, 0)))
    # im2col-lite for layer 1: merge the K1 taps into the contraction dim
    # (K1*4 columns, k-major / channel-minor, matching prep_conv's row order)
    x1 = jnp.concatenate([xc[:, k:k + l1_out, :] for k in range(K1)], axis=-1)

    y = conv_stack(x1, prep['w1'], prep['s1'], prep['w2'], prep['s2'],
                   prep['w3'], prep['s3'], cfg, geom, b_tile)     # (n_pad, lp3, c3p)

    c3p = y.shape[-1]
    flat = y.reshape(n_pad, geom['lp3'] * c3p)                    # channel-last flatten

    rows = min(256, n_pad)
    n_mlp = _round_up(n_pad, rows)
    if n_mlp != n_pad:
        flat = jnp.pad(flat, ((0, n_mlp - n_pad), (0, 0)))
    out = fused_mlp(flat, prep['fc1w'], prep['fc1b'], prep['fc2w'], prep['fc2b'],
                    prep['fc3w'], prep['fc3b'], rows)
    return out[:N, :cfg['numClasses']]


# ---------------------------------------------------------------------------
# Parameter init + pure-JAX reference (correctness check)
# ---------------------------------------------------------------------------
def init_params(key, cfg):
    ks = jax.random.split(key, 24)
    nrm = lambda k, shape, s=0.1: s * jax.random.normal(k, shape, dtype=jnp.float32)
    p = {}
    p['w1'] = nrm(ks[0], (cfg['CNN1filters'], 4, cfg['CNN1filterSize']))
    p['w2'] = nrm(ks[1], (cfg['CNN2filters'], cfg['CNN1filters'], cfg['CNN2filterSize']))
    p['w3'] = nrm(ks[2], (cfg['CNN3filters'], cfg['CNN2filters'], cfg['CNN3filterSize']))
    for i, c in enumerate([cfg['CNN1filters'], cfg['CNN2filters'], cfg['CNN3filters']], 1):
        base = 3 + 4 * (i - 1)
        p[f'bn{i}_gamma'] = 1.0 + nrm(ks[base], (c,))
        p[f'bn{i}_beta'] = nrm(ks[base + 1], (c,))
        p[f'bn{i}_mean'] = nrm(ks[base + 2], (c,))
        p[f'bn{i}_var'] = 1.0 + 0.1 * jnp.abs(jax.random.normal(ks[base + 3], (c,), jnp.float32))
    p['fc1_w'] = nrm(ks[16], (cfg['FC1outputSize'], cfg['FC1inputSize']))
    p['fc1_b'] = nrm(ks[17], (cfg['FC1outputSize'],))
    p['fc2_w'] = nrm(ks[18], (cfg['FC2outputSize'], cfg['FC1outputSize']))
    p['fc2_b'] = nrm(ks[19], (cfg['FC2outputSize'],))
    p['fc3_w'] = nrm(ks[20], (cfg['numClasses'], cfg['FC2outputSize']))
    p['fc3_b'] = nrm(ks[21], (cfg['numClasses'],))
    return p


def basset_reference(x, p, cfg):
    def conv_bn_relu(x, w, g, b, m, v, pad):
        y = jax.lax.conv_general_dilated(
            x, w, (1,), [(pad, pad)], dimension_numbers=('NCH', 'OIH', 'NCH'))
        s = g / jnp.sqrt(v + 1e-5)
        y = y * s[None, :, None] + (b - m * s)[None, :, None]
        return jnp.maximum(y, 0.0)

    def maxpool(x, pool):
        n, c, l = x.shape
        lp = l // pool
        return jnp.max(x[:, :, :lp * pool].reshape(n, c, lp, pool), axis=3)

    y = maxpool(conv_bn_relu(x, p['w1'], p['bn1_gamma'], p['bn1_beta'],
                             p['bn1_mean'], p['bn1_var'], cfg['CNN1padding']),
                cfg['CNN1poolSize'])
    y = conv_bn_relu(y, p['w2'], p['bn2_gamma'], p['bn2_beta'],
                     p['bn2_mean'], p['bn2_var'], cfg['CNN2padding'])
    y = maxpool(conv_bn_relu(y, p['w3'], p['bn3_gamma'], p['bn3_beta'],
                             p['bn3_mean'], p['bn3_var'], cfg['CNN3padding']),
                cfg['CNN3poolSize'])
    y = y.reshape(y.shape[0], -1)
    y = jnp.maximum(y @ p['fc1_w'].T + p['fc1_b'], 0.0)
    y = jnp.maximum(y @ p['fc2_w'].T + p['fc2_b'], 0.0)
    return y @ p['fc3_w'].T + p['fc3_b']


# ---------------------------------------------------------------------------
if __name__ == "__main__":
    N, L = 8, 32
    cfg = dict(
        CNN1filters=8,  CNN1filterSize=5, CNN1poolSize=2, CNN1padding=2,
        CNN2filters=16, CNN2filterSize=3, CNN2poolSize=1, CNN2padding=1,
        CNN3filters=16, CNN3filterSize=3, CNN3poolSize=2, CNN3padding=1,
        FC1inputSize=16 * 8,  # CNN3filters * final length (32 -> 16 -> 16 -> 8)
        FC1outputSize=32, FC2outputSize=32, numClasses=3,
    )
    # batch tile: a few samples per grid step, keep >=2 grid steps (v7x 2 TCs)
    B_TILE = max(1, min(8, (N + 1) // 2))

    key = jax.random.PRNGKey(0)
    k_x, k_p = jax.random.split(key)
    x = jax.random.normal(k_x, (N, 4, L), dtype=jnp.float32)  # NCW like PyTorch
    params = init_params(k_p, cfg)

    # weight folding/padding/permutation done ONCE, off the forward path
    prep = jax.tree_util.tree_map(jax.block_until_ready,
                                  prepare_basset_params(params, cfg, L))

    fwd = jax.jit(functools.partial(basset_forward, cfg=cfg, b_tile=B_TILE))
    out = jax.block_until_ready(fwd(x, prep))
    ref = jax.block_until_ready(basset_reference(x, params, cfg))

    assert out.shape == (N, cfg['numClasses'])
    assert not bool(jnp.isnan(out).any())          # mirrors the torch NaN assert
    assert jnp.allclose(out, ref, atol=2e-4, rtol=2e-4), (out, ref)
    print("KERNEL_OK")
</pallas_src>

<mosaic_0001>
module attributes {stable_mosaic.version = 11 : i64} {
  func.func @_conv_stack_kernel(%arg0: i32, %arg1: memref<4x32x20xf32, #tpu.memory_space<vmem>>, %arg2: memref<20x128xf32, #tpu.memory_space<vmem>>, %arg3: memref<1x128xf32, #tpu.memory_space<vmem>>, %arg4: memref<384x128xf32, #tpu.memory_space<vmem>>, %arg5: memref<1x128xf32, #tpu.memory_space<vmem>>, %arg6: memref<384x128xf32, #tpu.memory_space<vmem>>, %arg7: memref<1x128xf32, #tpu.memory_space<vmem>>, %arg8: memref<4x8x128xf32, #tpu.memory_space<vmem>>, %arg9: memref<4x18x128xf32, #tpu.memory_space<vmem>>, %arg10: memref<4x18x128xf32, #tpu.memory_space<vmem>>) attributes {dimension_semantics = [#tpu.dimension_semantics<parallel>], iteration_bounds = array<i64: 2>, scalar_prefetch = 0 : i64, scratch_operands = 2 : i64, tpu.core_type = #tpu.core_type<tc>, window_params = [{transform_indices = @transform_0, window_bounds = array<i64: 4, 32, 20>}, {pipeline_mode = #tpu.pipeline_mode<synchronous>, transform_indices = @transform_1, window_bounds = array<i64: 20, 128>}, {pipeline_mode = #tpu.pipeline_mode<synchronous>, transform_indices = @transform_2, window_bounds = array<i64: 1, 128>}, {pipeline_mode = #tpu.pipeline_mode<synchronous>, transform_indices = @transform_3, window_bounds = array<i64: 384, 128>}, {pipeline_mode = #tpu.pipeline_mode<synchronous>, transform_indices = @transform_4, window_bounds = array<i64: 1, 128>}, {pipeline_mode = #tpu.pipeline_mode<synchronous>, transform_indices = @transform_5, window_bounds = array<i64: 384, 128>}, {pipeline_mode = #tpu.pipeline_mode<synchronous>, transform_indices = @transform_6, window_bounds = array<i64: 1, 128>}, {transform_indices = @transform_7, window_bounds = array<i64: 4, 8, 128>}]} {
    %c0 = arith.constant 0 : index
    %c0_0 = arith.constant 0 : index
    %c0_1 = arith.constant 0 : index
    %0 = vector.load %arg1[%c0, %c0_0, %c0_1] : memref<4x32x20xf32, #tpu.memory_space<vmem>>, vector<4x32x20xf32>
    %1 = vector.shape_cast %0 : vector<4x32x20xf32> to vector<128x20xf32>
    %c0_2 = arith.constant 0 : index
    %c0_3 = arith.constant 0 : index
    %2 = vector.load %arg2[%c0_2, %c0_3] : memref<20x128xf32, #tpu.memory_space<vmem>>, vector<20x128xf32>
    %cst = arith.constant dense<0.000000e+00> : vector<128x128xf32>
    %3 = tpu.matmul %1, %2, %cst {dimension_numbers = #tpu.dot_dimension_numbers<[1], [0], [0], [1], [0, 0, 1, 1], [], []>} : vector<128x20xf32>, vector<20x128xf32>, vector<128x128xf32> -> vector<128x128xf32>
    %c0_4 = arith.constant 0 : index
    %c0_5 = arith.constant 0 : index
    %4 = vector.load %arg3[%c0_4, %c0_5] : memref<1x128xf32, #tpu.memory_space<vmem>>, vector<1x128xf32>
    %5 = vector.broadcast %4 : vector<1x128xf32> to vector<128x128xf32>
    %6 = arith.addf %3, %5 : vector<128x128xf32>
    %cst_6 = arith.constant 0.000000e+00 : f32
    %7 = vector.broadcast %cst_6 : f32 to vector<128x128xf32>
    %8 = arith.maximumf %6, %7 : vector<128x128xf32>
    %9 = vector.shape_cast %8 : vector<128x128xf32> to vector<64x2x128xf32>
    %cst_7 = arith.constant dense<0xFF800000> : vector<64x128xf32>
    %10 = vector.multi_reduction <maximumf>, %9, %cst_7 [1] : vector<64x2x128xf32> to vector<64x128xf32>
    %11 = vector.shape_cast %10 : vector<64x128xf32> to vector<4x16x128xf32>
    %cst_8 = arith.constant 0.000000e+00 : f32
    %12 = vector.broadcast %cst_8 : f32 to vector<4x18x128xf32>
    %c0_9 = arith.constant 0 : index
    %c0_10 = arith.constant 0 : index
    %c0_11 = arith.constant 0 : index
    %13 = vector.load %arg9[%c0_9, %c0_10, %c0_11] : memref<4x18x128xf32, #tpu.memory_space<vmem>>, vector<4x18x128xf32>
    tpu.vector_store %arg9[%c0_9, %c0_10, %c0_11], %12 {strides = array<i32>} : memref<4x18x128xf32, #tpu.memory_space<vmem>>, vector<4x18x128xf32>,
    %c0_12 = arith.constant 0 : index
    %c1 = arith.constant 1 : index
    %c0_13 = arith.constant 0 : index
    %14 = vector.load %arg9[%c0_12, %c1, %c0_13] : memref<4x18x128xf32, #tpu.memory_space<vmem>>, vector<4x16x128xf32>
    tpu.vector_store %arg9[%c0_12, %c1, %c0_13], %11 {strides = array<i32>} : memref<4x18x128xf32, #tpu.memory_space<vmem>>, vector<4x16x128xf32>,
    %cst_14 = arith.constant 0.000000e+00 : f32
    %15 = vector.broadcast %cst_14 : f32 to vector<64x128xf32>
    %c0_15 = arith.constant 0 : index
    %c0_16 = arith.constant 0 : index
    %c0_17 = arith.constant 0 : index
    %16 = vector.load %arg9[%c0_15, %c0_16, %c0_17] : memref<4x18x128xf32, #tpu.memory_space<vmem>>, vector<4x16x128xf32>
    %17 = vector.shape_cast %16 : vector<4x16x128xf32> to vector<64x128xf32>
    %c0_18 = arith.constant 0 : index
    %c0_19 = arith.constant 0 : index
    %18 = vector.load %arg4[%c0_18, %c0_19] : memref<384x128xf32, #tpu.memory_space<vmem>>, vector<128x128xf32>
    %cst_20 = arith.constant dense<0.000000e+00> : vector<64x128xf32>
    %19 = tpu.matmul %17, %18, %cst_20 {dimension_numbers = #tpu.dot_dimension_numbers<[1], [0], [0], [1], [0, 0, 1, 1], [], []>} : vector<64x128xf32>, vector<128x128xf32>, vector<64x128xf32> -> vector<64x128xf32>
    %20 = arith.addf %15, %19 : vector<64x128xf32>
    %c0_21 = arith.constant 0 : index
    %c1_22 = arith.constant 1 : index
    %c0_23 = arith.constant 0 : index
    %21 = vector.load %arg9[%c0_21, %c1_22, %c0_23] : memref<4x18x128xf32, #tpu.memory_space<vmem>>, vector<4x16x128xf32>
    %22 = vector.shape_cast %21 : vector<4x16x128xf32> to vector<64x128xf32>
    %c128 = arith.constant 128 : index
    %c0_24 = arith.constant 0 : index
    %23 = vector.load %arg4[%c128, %c0_24] : memref<384x128xf32, #tpu.memory_space<vmem>>, vector<128x128xf32>
    %cst_25 = arith.constant dense<0.000000e+00> : vector<64x128xf32>
    %24 = tpu.matmul %22, %23, %cst_25 {dimension_numbers = #tpu.dot_dimension_numbers<[1], [0], [0], [1], [0, 0, 1, 1], [], []>} : vector<64x128xf32>, vector<128x128xf32>, vector<64x128xf32> -> vector<64x128xf32>
    %25 = arith.addf %20, %24 : vector<64x128xf32>
    %c0_26 = arith.constant 0 : index
    %c2 = arith.constant 2 : index
    %c0_27 = arith.constant 0 : index
    %26 = vector.load %arg9[%c0_26, %c2, %c0_27] : memref<4x18x128xf32, #tpu.memory_space<vmem>>, vector<4x16x128xf32>
    %27 = vector.shape_cast %26 : vector<4x16x128xf32> to vector<64x128xf32>
    %c256 = arith.constant 256 : index
    %c0_28 = arith.constant 0 : index
    %28 = vector.load %arg4[%c256, %c0_28] : memref<384x128xf32, #tpu.memory_space<vmem>>, vector<128x128xf32>
    %cst_29 = arith.constant dense<0.000000e+00> : vector<64x128xf32>
    %29 = tpu.matmul %27, %28, %cst_29 {dimension_numbers = #tpu.dot_dimension_numbers<[1], [0], [0], [1], [0, 0, 1, 1], [], []>} : vector<64x128xf32>, vector<128x128xf32>, vector<64x128xf32> -> vector<64x128xf32>
    %30 = arith.addf %25, %29 : vector<64x128xf32>
    %c0_30 = arith.constant 0 : index
    %c0_31 = arith.constant 0 : index
    %31 = vector.load %arg5[%c0_30, %c0_31] : memref<1x128xf32, #tpu.memory_space<vmem>>, vector<1x128xf32>
    %32 = vector.broadcast %31 : vector<1x128xf32> to vector<64x128xf32>
    %33 = arith.addf %30, %32 : vector<64x128xf32>
    %cst_32 = arith.constant 0.000000e+00 : f32
    %34 = vector.broadcast %cst_32 : f32 to vector<64x128xf32>
    %35 = arith.maximumf %33, %34 : vector<64x128xf32>
    %36 = vector.shape_cast %35 : vector<64x128xf32> to vector<4x16x128xf32>
    %cst_33 = arith.constant 0.000000e+00 : f32
    %37 = vector.broadcast %cst_33 : f32 to vector<4x18x128xf32>
    %c0_34 = arith.constant 0 : index
    %c0_35 = arith.constant 0 : index
    %c0_36 = arith.constant 0 : index
    %38 = vector.load %arg10[%c0_34, %c0_35, %c0_36] : memref<4x18x128xf32, #tpu.memory_space<vmem>>, vector<4x18x128xf32>
    tpu.vector_store %arg10[%c0_34, %c0_35, %c0_36], %37 {strides = array<i32>} : memref<4x18x128xf32, #tpu.memory_space<vmem>>, vector<4x18x128xf32>,
    %c0_37 = arith.constant 0 : index
    %c1_38 = arith.constant 1 : index
    %c0_39 = arith.constant 0 : index
    %39 = vector.load %arg10[%c0_37, %c1_38, %c0_39] : memref<4x18x128xf32, #tpu.memory_space<vmem>>, vector<4x16x128xf32>
    tpu.vector_store %arg10[%c0_37, %c1_38, %c0_39], %36 {strides = array<i32>} : memref<4x18x128xf32, #tpu.memory_space<vmem>>, vector<4x16x128xf32>,
    %cst_40 = arith.constant 0.000000e+00 : f32
    %40 = vector.broadcast %cst_40 : f32 to vector<64x128xf32>
    %c0_41 = arith.constant 0 : index
    %c0_42 = arith.constant 0 : index
    %c0_43 = arith.constant 0 : index
    %41 = vector.load %arg10[%c0_41, %c0_42, %c0_43] : memref<4x18x128xf32, #tpu.memory_space<vmem>>, vector<4x16x128xf32>
    %42 = vector.shape_cast %41 : vector<4x16x128xf32> to vector<64x128xf32>
    %c0_44 = arith.constant 0 : index
    %c0_45 = arith.constant 0 : index
    %43 = vector.load %arg6[%c0_44, %c0_45] : memref<384x128xf32, #tpu.memory_space<vmem>>, vector<128x128xf32>
    %cst_46 = arith.constant dense<0.000000e+00> : vector<64x128xf32>
    %44 = tpu.matmul %42, %43, %cst_46 {dimension_numbers = #tpu.dot_dimension_numbers<[1], [0], [0], [1], [0, 0, 1, 1], [], []>} : vector<64x128xf32>, vector<128x128xf32>, vector<64x128xf32> -> vector<64x128xf32>
    %45 = arith.addf %40, %44 : vector<64x128xf32>
    %c0_47 = arith.constant 0 : index
    %c1_48 = arith.constant 1 : index
    %c0_49 = arith.constant 0 : index
    %46 = vector.load %arg10[%c0_47, %c1_48, %c0_49] : memref<4x18x128xf32, #tpu.memory_space<vmem>>, vector<4x16x128xf32>
    %47 = vector.shape_cast %46 : vector<4x16x128xf32> to vector<64x128xf32>
    %c128_50 = arith.constant 128 : index
    %c0_51 = arith.constant 0 : index
    %48 = vector.load %arg6[%c128_50, %c0_51] : memref<384x128xf32, #tpu.memory_space<vmem>>, vector<128x128xf32>
    %cst_52 = arith.constant dense<0.000000e+00> : vector<64x128xf32>
    %49 = tpu.matmul %47, %48, %cst_52 {dimension_numbers = #tpu.dot_dimension_numbers<[1], [0], [0], [1], [0, 0, 1, 1], [], []>} : vector<64x128xf32>, vector<128x128xf32>, vector<64x128xf32> -> vector<64x128xf32>
    %50 = arith.addf %45, %49 : vector<64x128xf32>
    %c0_53 = arith.constant 0 : index
    %c2_54 = arith.constant 2 : index
    %c0_55 = arith.constant 0 : index
    %51 = vector.load %arg10[%c0_53, %c2_54, %c0_55] : memref<4x18x128xf32, #tpu.memory_space<vmem>>, vector<4x16x128xf32>
    %52 = vector.shape_cast %51 : vector<4x16x128xf32> to vector<64x128xf32>
    %c256_56 = arith.constant 256 : index
    %c0_57 = arith.constant 0 : index
    %53 = vector.load %arg6[%c256_56, %c0_57] : memref<384x128xf32, #tpu.memory_space<vmem>>, vector<128x128xf32>
    %cst_58 = arith.constant dense<0.000000e+00> : vector<64x128xf32>
    %54 = tpu.matmul %52, %53, %cst_58 {dimension_numbers = #tpu.dot_dimension_numbers<[1], [0], [0], [1], [0, 0, 1, 1], [], []>} : vector<64x128xf32>, vector<128x128xf32>, vector<64x128xf32> -> vector<64x128xf32>
    %55 = arith.addf %50, %54 : vector<64x128xf32>
    %c0_59 = arith.constant 0 : index
    %c0_60 = arith.constant 0 : index
    %56 = vector.load %arg7[%c0_59, %c0_60] : memref<1x128xf32, #tpu.memory_space<vmem>>, vector<1x128xf32>
    %57 = vector.broadcast %56 : vector<1x128xf32> to vector<64x128xf32>
    %58 = arith.addf %55, %57 : vector<64x128xf32>
    %cst_61 = arith.constant 0.000000e+00 : f32
    %59 = vector.broadcast %cst_61 : f32 to vector<64x128xf32>
    %60 = arith.maximumf %58, %59 : vector<64x128xf32>
    %61 = vector.shape_cast %60 : vector<64x128xf32> to vector<32x2x128xf32>
    %cst_62 = arith.constant dense<0xFF800000> : vector<32x128xf32>
    %62 = vector.multi_reduction <maximumf>, %61, %cst_62 [1] : vector<32x2x128xf32> to vector<32x128xf32>
    %63 = vector.shape_cast %62 : vector<32x128xf32> to vector<4x8x128xf32>
    %c0_63 = arith.constant 0 : index
    %c0_64 = arith.constant 0 : index
    %c0_65 = arith.constant 0 : index
    %64 = vector.load %arg8[%c0_63, %c0_64, %c0_65] : memref<4x8x128xf32, #tpu.memory_space<vmem>>, vector<4x8x128xf32>
    tpu.vector_store %arg8[%c0_63, %c0_64, %c0_65], %63 {strides = array<i32>} : memref<4x8x128xf32, #tpu.memory_space<vmem>>, vector<4x8x128xf32>,
    return
  }
  func.func @transform_0(%arg0: i32) -> (i32, i32, i32) {
    %c0_i32 = arith.constant 0 : i32
    %c0_i32_0 = arith.constant 0 : i32
    %c0_i32_1 = arith.constant 0 : i32
    return %arg0, %c0_i32, %c0_i32_0 : i32, i32, i32
  }
  func.func @transform_1(%arg0: i32) -> (i32, i32) {
    %c0_i32 = arith.constant 0 : i32
    %c0_i32_0 = arith.constant 0 : i32
    %c0_i32_1 = arith.constant 0 : i32
    return %c0_i32, %c0_i32_0 : i32, i32
  }
  func.func @transform_2(%arg0: i32) -> (i32, i32) {
    %c0_i32 = arith.constant 0 : i32
    %c0_i32_0 = arith.constant 0 : i32
    %c0_i32_1 = arith.constant 0 : i32
    return %c0_i32, %c0_i32_0 : i32, i32
  }
  func.func @transform_3(%arg0: i32) -> (i32, i32) {
    %c0_i32 = arith.constant 0 : i32
    %c0_i32_0 = arith.constant 0 : i32
    %c0_i32_1 = arith.constant 0 : i32
    return %c0_i32, %c0_i32_0 : i32, i32
  }
  func.func @transform_4(%arg0: i32) -> (i32, i32) {
    %c0_i32 = arith.constant 0 : i32
    %c0_i32_0 = arith.constant 0 : i32
    %c0_i32_1 = arith.constant 0 : i32
    return %c0_i32, %c0_i32_0 : i32, i32
  }
  func.func @transform_5(%arg0: i32) -> (i32, i32) {
    %c0_i32 = arith.constant 0 : i32
    %c0_i32_0 = arith.constant 0 : i32
    %c0_i32_1 = arith.constant 0 : i32
    return %c0_i32, %c0_i32_0 : i32, i32
  }
  func.func @transform_6(%arg0: i32) -> (i32, i32) {
    %c0_i32 = arith.constant 0 : i32
    %c0_i32_0 = arith.constant 0 : i32
    %c0_i32_1 = arith.constant 0 : i32
    return %c0_i32, %c0_i32_0 : i32, i32
  }
  func.func @transform_7(%arg0: i32) -> (i32, i32, i32) {
    %c0_i32 = arith.constant 0 : i32
    %c0_i32_0 = arith.constant 0 : i32
    %c0_i32_1 = arith.constant 0 : i32
    return %arg0, %c0_i32, %c0_i32_0 : i32, i32, i32
  }
}

module attributes {stable_mosaic.version = 11 : i64} {
  func.func @_mlp_kernel(%arg0: i32, %arg1: memref<8x1024xf32, #tpu.memory_space<vmem>>, %arg2: memref<1024x128xf32, #tpu.memory_space<vmem>>, %arg3: memref<1x128xf32, #tpu.memory_space<vmem>>, %arg4: memref<128x128xf32, #tpu.memory_space<vmem>>, %arg5: memref<1x128xf32, #tpu.memory_space<vmem>>, %arg6: memref<128x128xf32, #tpu.memory_space<vmem>>, %arg7: memref<1x128xf32, #tpu.memory_space<vmem>>, %arg8: memref<8x128xf32, #tpu.memory_space<vmem>>) attributes {dimension_semantics = [#tpu.dimension_semantics<parallel>], iteration_bounds = array<i64: 1>, scalar_prefetch = 0 : i64, scratch_operands = 0 : i64, tpu.core_type = #tpu.core_type<tc>, window_params = [{transform_indices = @transform_0, window_bounds = array<i64: 8, 1024>}, {pipeline_mode = #tpu.pipeline_mode<synchronous>, transform_indices = @transform_1, window_bounds = array<i64: 1024, 128>}, {pipeline_mode = #tpu.pipeline_mode<synchronous>, transform_indices = @transform_2, window_bounds = array<i64: 1, 128>}, {pipeline_mode = #tpu.pipeline_mode<synchronous>, transform_indices = @transform_3, window_bounds = array<i64: 128, 128>}, {pipeline_mode = #tpu.pipeline_mode<synchronous>, transform_indices = @transform_4, window_bounds = array<i64: 1, 128>}, {pipeline_mode = #tpu.pipeline_mode<synchronous>, transform_indices = @transform_5, window_bounds = array<i64: 128, 128>}, {pipeline_mode = #tpu.pipeline_mode<synchronous>, transform_indices = @transform_6, window_bounds = array<i64: 1, 128>}, {transform_indices = @transform_7, window_bounds = array<i64: 8, 128>}]} {
    %c0 = arith.constant 0 : index
    %c0_0 = arith.constant 0 : index
    %0 = vector.load %arg1[%c0, %c0_0] : memref<8x1024xf32, #tpu.memory_space<vmem>>, vector<8x1024xf32>
    %c0_1 = arith.constant 0 : index
    %c0_2 = arith.constant 0 : index
    %1 = vector.load %arg2[%c0_1, %c0_2] : memref<1024x128xf32, #tpu.memory_space<vmem>>, vector<1024x128xf32>
    %cst = arith.constant dense<0.000000e+00> : vector<8x128xf32>
    %2 = tpu.matmul %0, %1, %cst {dimension_numbers = #tpu.dot_dimension_numbers<[1], [0], [0], [1], [0, 0, 1, 1], [], []>} : vector<8x1024xf32>, vector<1024x128xf32>, vector<8x128xf32> -> vector<8x128xf32>
    %c0_3 = arith.constant 0 : index
    %c0_4 = arith.constant 0 : index
    %3 = vector.load %arg3[%c0_3, %c0_4] : memref<1x128xf32, #tpu.memory_space<vmem>>, vector<1x128xf32>
    %4 = vector.broadcast %3 : vector<1x128xf32> to vector<8x128xf32>
    %5 = arith.addf %2, %4 : vector<8x128xf32>
    %cst_5 = arith.constant 0.000000e+00 : f32
    %6 = vector.broadcast %cst_5 : f32 to vector<8x128xf32>
    %7 = arith.maximumf %5, %6 : vector<8x128xf32>
    %c0_6 = arith.constant 0 : index
    %c0_7 = arith.constant 0 : index
    %8 = vector.load %arg4[%c0_6, %c0_7] : memref<128x128xf32, #tpu.memory_space<vmem>>, vector<128x128xf32>
    %cst_8 = arith.constant dense<0.000000e+00> : vector<8x128xf32>
    %9 = tpu.matmul %7, %8, %cst_8 {dimension_numbers = #tpu.dot_dimension_numbers<[1], [0], [0], [1], [0, 0, 1, 1], [], []>} : vector<8x128xf32>, vector<128x128xf32>, vector<8x128xf32> -> vector<8x128xf32>
    %c0_9 = arith.constant 0 : index
    %c0_10 = arith.constant 0 : index
    %10 = vector.load %arg5[%c0_9, %c0_10] : memref<1x128xf32, #tpu.memory_space<vmem>>, vector<1x128xf32>
    %11 = vector.broadcast %10 : vector<1x128xf32> to vector<8x128xf32>
    %12 = arith.addf %9, %11 : vector<8x128xf32>
    %cst_11 = arith.constant 0.000000e+00 : f32
    %13 = vector.broadcast %cst_11 : f32 to vector<8x128xf32>
    %14 = arith.maximumf %12, %13 : vector<8x128xf32>
    %c0_12 = arith.constant 0 : index
    %c0_13 = arith.constant 0 : index
    %15 = vector.load %arg6[%c0_12, %c0_13] : memref<128x128xf32, #tpu.memory_space<vmem>>, vector<128x128xf32>
    %cst_14 = arith.constant dense<0.000000e+00> : vector<8x128xf32>
    %16 = tpu.matmul %14, %15, %cst_14 {dimension_numbers = #tpu.dot_dimension_numbers<[1], [0], [0], [1], [0, 0, 1, 1], [], []>} : vector<8x128xf32>, vector<128x128xf32>, vector<8x128xf32> -> vector<8x128xf32>
    %c0_15 = arith.constant 0 : index
    %c0_16 = arith.constant 0 : index
    %17 = vector.load %arg7[%c0_15, %c0_16] : memref<1x128xf32, #tpu.memory_space<vmem>>, vector<1x128xf32>
    %18 = vector.broadcast %17 : vector<1x128xf32> to vector<8x128xf32>
    %19 = arith.addf %16, %18 : vector<8x128xf32>
    %c0_17 = arith.constant 0 : index
    %c0_18 = arith.constant 0 : index
    %20 = vector.load %arg8[%c0_17, %c0_18] : memref<8x128xf32, #tpu.memory_space<vmem>>, vector<8x128xf32>
    tpu.vector_store %arg8[%c0_17, %c0_18], %19 {strides = array<i32>} : memref<8x128xf32, #tpu.memory_space<vmem>>, vector<8x128xf32>,
    return
  }
  func.func @transform_0(%arg0: i32) -> (i32, i32) {
    %c0_i32 = arith.constant 0 : i32
    %c0_i32_0 = arith.constant 0 : i32
    return %arg0, %c0_i32 : i32, i32
  }
  func.func @transform_1(%arg0: i32) -> (i32, i32) {
    %c0_i32 = arith.constant 0 : i32
    %c0_i32_0 = arith.constant 0 : i32
    %c0_i32_1 = arith.constant 0 : i32
    return %c0_i32, %c0_i32_0 : i32, i32
  }
  func.func @transform_2(%arg0: i32) -> (i32, i32) {
    %c0_i32 = arith.constant 0 : i32
    %c0_i32_0 = arith.constant 0 : i32
    %c0_i32_1 = arith.constant 0 : i32
    return %c0_i32, %c0_i32_0 : i32, i32
  }
  func.func @transform_3(%arg0: i32) -> (i32, i32) {
    %c0_i32 = arith.constant 0 : i32
    %c0_i32_0 = arith.constant 0 : i32
    %c0_i32_1 = arith.constant 0 : i32
    return %c0_i32, %c0_i32_0 : i32, i32
  }
  func.func @transform_4(%arg0: i32) -> (i32, i32) {
    %c0_i32 = arith.constant 0 : i32
    %c0_i32_0 = arith.constant 0 : i32
    %c0_i32_1 = arith.constant 0 : i32
    return %c0_i32, %c0_i32_0 : i32, i32
  }
  func.func @transform_5(%arg0: i32) -> (i32, i32) {
    %c0_i32 = arith.constant 0 : i32
    %c0_i32_0 = arith.constant 0 : i32
    %c0_i32_1 = arith.constant 0 : i32
    return %c0_i32, %c0_i32_0 : i32, i32
  }
  func.func @transform_6(%arg0: i32) -> (i32, i32) {
    %c0_i32 = arith.constant 0 : i32
    %c0_i32_0 = arith.constant 0 : i32
    %c0_i32_1 = arith.constant 0 : i32
    return %c0_i32, %c0_i32_0 : i32, i32
  }
  func.func @transform_7(%arg0: i32) -> (i32, i32) {
    %c0_i32 = arith.constant 0 : i32
    %c0_i32_0 = arith.constant 0 : i32
    return %arg0, %c0_i32 : i32, i32
  }
}

</mosaic_0001>

<bundles_post_ra>
// kernel: basset_forward.3
= control target key start
LH: loop header
LB: loop body
LE: loop exit
PB: predicated region body
PF: predicated region fallthrough
CT: control target
= control target key end

     0   :  { %s972_s1 = inlined_call_operand.vmem [shape: f32[1024,128], index: 1, kind: input, shape index: {}]   ;;  %s973_s2 = inlined_call_operand.vmem [shape: f32[1,128], index: 2, kind: input, shape index: {}]   ;;  %s974_s0 = inlined_call_operand.vmem [shape: f32[8,1024], index: 0, kind: input, shape index: {}]   ;;  %s975_s3 = inlined_call_operand.vmem [shape: f32[128,128], index: 3, kind: input, shape index: {}]   ;;  %s976_s4 = inlined_call_operand.vmem [shape: f32[1,128], index: 4, kind: input, shape index: {}]   ;;  %s977_s5 = inlined_call_operand.vmem [shape: f32[128,128], index: 5, kind: input, shape index: {}]   ;;  %s978_s6 = inlined_call_operand.vmem [shape: f32[1,128], index: 6, kind: input, shape index: {}]   ;;  %s979_s7 = inlined_call_operand.vmem [shape: f32[8,128], index: 7, kind: output, shape index: {}]  }
   0x1   :  { %v81_v0 = vld [vmem:[%s972_s1 + $0x178] sm:$0xff]  ;;  %v80_v2 = vld [vmem:[%s972_s1 + $0x170] sm:$0xff]  ;;  %v79_v6 = vld [vmem:[%s972_s1 + $0x168] sm:$0xff] }
   0x2   :  { %v49_v1 = vld [vmem:[%s972_s1 + $0x78] sm:$0xff]  ;;  %206 = vmatpush.msra.mxu2 %v81_v0  ;;  %v48_v4 = vld [vmem:[%s972_s1 + $0x70] sm:$0xff]  ;;  %v47_v8 = vld [vmem:[%s972_s1 + $0x68] sm:$0xff] }
   0x3   :  { %166 = vmatpush.msra.mxu0 %v49_v1  ;;  %v97_v3 = vld [vmem:[%s972_s1 + $0x1f8] sm:$0xff]  ;;  %v96_v7 = vld [vmem:[%s972_s1 + $0x1f0] sm:$0xff]  ;;  %v95_v10 = vld [vmem:[%s972_s1 + $0x1e8] sm:$0xff] }
   0x4   :  { %v65_v5 = vld [vmem:[%s972_s1 + $0xf8] sm:$0xff]  ;;  %226 = vmatpush.msra.mxu3 %v97_v3  ;;  %207 = vmatpush.msra.mxu2 %v80_v2  ;;  %v64_v9 = vld [vmem:[%s972_s1 + $0xf0] sm:$0xff]  ;;  %v78_v11 = vld [vmem:[%s972_s1 + $0x160] sm:$0xff] }
   0x5   :  { %186 = vmatpush.msra.mxu1 %v65_v5  ;;  %167 = vmatpush.msra.mxu0 %v48_v4  ;;  %v46_v12 = vld [vmem:[%s972_s1 + $0x60] sm:$0xff]  ;;  %v63_v13 = vld [vmem:[%s972_s1 + $0xe8] sm:$0xff]  ;;  %v77_v16 = vld [vmem:[%s972_s1 + $0x158] sm:$0xff] }
   0x6   :  { %227 = vmatpush.msra.mxu3 %v96_v7  ;;  %208 = vmatpush.msra.mxu2 %v79_v6  ;;  %v94_v14 = vld [vmem:[%s972_s1 + $0x1e0] sm:$0xff]  ;;  %v45_v17 = vld [vmem:[%s972_s1 + $0x58] sm:$0xff]  ;;  %v76_v20 = vld [vmem:[%s972_s1 + $0x150] sm:$0xff] }
   0x7   :  { %187 = vmatpush.msra.mxu1 %v64_v9  ;;  %168 = vmatpush.msra.mxu0 %v47_v8  ;;  %v62_v15 = vld [vmem:[%s972_s1 + $0xe0] sm:$0xff]  ;;  %v93_v18 = vld [vmem:[%s972_s1 + $0x1d8] sm:$0xff]  ;;  %v44_v21 = vld [vmem:[%s972_s1 + $0x50] sm:$0xff] }
   0x8   :  { %228 = vmatpush.msra.mxu3 %v95_v10  ;;  %209 = vmatpush.msra.mxu2 %v78_v11  ;;  %v61_v19 = vld [vmem:[%s972_s1 + $0xd8] sm:$0xff]  ;;  %v92_v22 = vld [vmem:[%s972_s1 + $0x1d0] sm:$0xff]  ;;  %v75_v24 = vld [vmem:[%s972_s1 + $0x148] sm:$0xff] }
   0x9   :  { %188 = vmatpush.msra.mxu1 %v63_v13  ;;  %169 = vmatpush.msra.mxu0 %v46_v12  ;;  %v60_v23 = vld [vmem:[%s972_s1 + $0xd0] sm:$0xff]  ;;  %v43_v25 = vld [vmem:[%s972_s1 + $0x48] sm:$0xff]  ;;  %v74_v28 = vld [vmem:[%s972_s1 + $0x140] sm:$0xff] }
   0xa   :  { %229 = vmatpush.msra.mxu3 %v94_v14  ;;  %210 = vmatpush.msra.mxu2 %v77_v16  ;;  %v91_v26 = vld [vmem:[%s972_s1 + $0x1c8] sm:$0xff]  ;;  %v42_v29 = vld [vmem:[%s972_s1 + $0x40] sm:$0xff]  ;;  %v73_v32 = vld [vmem:[%s972_s1 + $0x138] sm:$0xff] }
   0xb   :  { %189 = vmatpush.msra.mxu1 %v62_v15  ;;  %170 = vmatpush.msra.mxu0 %v45_v17  ;;  %v59_v27 = vld [vmem:[%s972_s1 + $0xc8] sm:$0xff]  ;;  %v90_v30 = vld [vmem:[%s972_s1 + $0x1c0] sm:$0xff]  ;;  %v41_v33 = vld [vmem:[%s972_s1 + $0x38] sm:$0xff] }
   0xc   :  { %230 = vmatpush.msra.mxu3 %v93_v18  ;;  %211 = vmatpush.msra.mxu2 %v76_v20  ;;  %v58_v31 = vld [vmem:[%s972_s1 + $0xc0] sm:$0xff]  ;;  %v89_v34 = vld [vmem:[%s972_s1 + $0x1b8] sm:$0xff]  ;;  %v72_v36 = vld [vmem:[%s972_s1 + $0x130] sm:$0xff] }
   0xd   :  { %190 = vmatpush.msra.mxu1 %v61_v19  ;;  %171 = vmatpush.msra.mxu0 %v44_v21  ;;  %v57_v35 = vld [vmem:[%s972_s1 + $0xb8] sm:$0xff]  ;;  %v40_v37 = vld [vmem:[%s972_s1 + $0x30] sm:$0xff]  ;;  %v71_v40 = vld [vmem:[%s972_s1 + $0x128] sm:$0xff] }
   0xe   :  { %231 = vmatpush.msra.mxu3 %v92_v22  ;;  %212 = vmatpush.msra.mxu2 %v75_v24  ;;  %v88_v38 = vld [vmem:[%s972_s1 + $0x1b0] sm:$0xff]  ;;  %v39_v41 = vld [vmem:[%s972_s1 + $0x28] sm:$0xff]  ;;  %v70_v44 = vld [vmem:[%s972_s1 + $0x120] sm:$0xff] }
   0xf   :  { %191 = vmatpush.msra.mxu1 %v60_v23  ;;  %172 = vmatpush.msra.mxu0 %v43_v25  ;;  %v56_v39 = vld [vmem:[%s972_s1 + $0xb0] sm:$0xff]  ;;  %v87_v42 = vld [vmem:[%s972_s1 + $0x1a8] sm:$0xff]  ;;  %v38_v45 = vld [vmem:[%s972_s1 + $0x20] sm:$0xff] }
  0x10   :  { %232 = vmatpush.msra.mxu3 %v91_v26  ;;  %213 = vmatpush.msra.mxu2 %v74_v28  ;;  %v55_v43 = vld [vmem:[%s972_s1 + $0xa8] sm:$0xff]  ;;  %v86_v46 = vld [vmem:[%s972_s1 + $0x1a0] sm:$0xff]  ;;  %v69_v48 = vld [vmem:[%s972_s1 + $0x118] sm:$0xff] }
  0x11   :  { %192 = vmatpush.msra.mxu1 %v59_v27  ;;  %173 = vmatpush.msra.mxu0 %v42_v29  ;;  %v54_v47 = vld [vmem:[%s972_s1 + $0xa0] sm:$0xff]  ;;  %v37_v49 = vld [vmem:[%s972_s1 + $0x18] sm:$0xff]  ;;  %v68_v52 = vld [vmem:[%s972_s1 + $0x110] sm:$0xff] }
  0x12   :  { %233 = vmatpush.msra.mxu3 %v90_v30  ;;  %214 = vmatpush.msra.mxu2 %v73_v32  ;;  %v85_v50 = vld [vmem:[%s972_s1 + $0x198] sm:$0xff]  ;;  %v36_v53 = vld [vmem:[%s972_s1 + $0x10] sm:$0xff]  ;;  %v67_v56 = vld [vmem:[%s972_s1 + $0x108] sm:$0xff] }
  0x13   :  { %193 = vmatpush.msra.mxu1 %v58_v31  ;;  %174 = vmatpush.msra.mxu0 %v41_v33  ;;  %v53_v51 = vld [vmem:[%s972_s1 + $0x98] sm:$0xff]  ;;  %v84_v54 = vld [vmem:[%s972_s1 + $0x190] sm:$0xff]  ;;  %v35_v57 = vld [vmem:[%s972_s1 + $0x8] sm:$0xff] }
  0x14   :  { %234 = vmatpush.msra.mxu3 %v89_v34  ;;  %215 = vmatpush.msra.mxu2 %v72_v36  ;;  %v52_v55 = vld [vmem:[%s972_s1 + $0x90] sm:$0xff]  ;;  %v83_v58 = vld [vmem:[%s972_s1 + $0x188] sm:$0xff]  ;;  %v66_v60 = vld [vmem:[%s972_s1 + $0x100] sm:$0xff] }
  0x15   :  { %194 = vmatpush.msra.mxu1 %v57_v35  ;;  %175 = vmatpush.msra.mxu0 %v40_v37  ;;  %v51_v59 = vld [vmem:[%s972_s1 + $0x88] sm:$0xff]  ;;  %v34_v61 = vld [vmem:[%s972_s1] sm:$0xff]  ;;  %v145_v62 = vld [vmem:[%s972_s1 + $0x378] sm:$0xff] }
  0x16   :  { %235 = vmatpush.msra.mxu3 %v88_v38  ;;  %216 = vmatpush.msra.mxu2 %v71_v40  ;;  %v82_v63 = vld [vmem:[%s972_s1 + $0x180] sm:$0xff]  ;;  %v113_v0 = vld [vmem:[%s972_s1 + $0x278] sm:$0xff]  ;;  %v144_v2 = vld [vmem:[%s972_s1 + $0x370] sm:$0xff] }
  0x17   :  { %195 = vmatpush.msra.mxu1 %v56_v39  ;;  %176 = vmatpush.msra.mxu0 %v39_v41  ;;  %v161_v1 = vld [vmem:[%s972_s1 + $0x3f8] sm:$0xff]  ;;  %v50_v3 = vld [vmem:[%s972_s1 + $0x80] sm:$0xff]  ;;  %v112_v4 = vld [vmem:[%s972_s1 + $0x270] sm:$0xff] }
  0x18   :  { %236 = vmatpush.msra.mxu3 %v87_v42  ;;  %217 = vmatpush.msra.mxu2 %v70_v44  ;;  %v129_v5 = vld [vmem:[%s972_s1 + $0x2f8] sm:$0xff]  ;;  %v143_v6 = vld [vmem:[%s972_s1 + $0x368] sm:$0xff]  ;;  %v160_v7 = vld [vmem:[%s972_s1 + $0x3f0] sm:$0xff] }
  0x19   :  { %196 = vmatpush.msra.mxu1 %v55_v43  ;;  %177 = vmatpush.msra.mxu0 %v38_v45  ;;  %v111_v8 = vld [vmem:[%s972_s1 + $0x268] sm:$0xff]  ;;  %v128_v9 = vld [vmem:[%s972_s1 + $0x2f0] sm:$0xff]  ;;  %v142_v10 = vld [vmem:[%s972_s1 + $0x360] sm:$0xff] }
  0x1a   :  { %237 = vmatpush.msra.mxu3 %v86_v46  ;;  %218 = vmatpush.msra.mxu2 %v69_v48  ;;  %v159_v11 = vld [vmem:[%s972_s1 + $0x3e8] sm:$0xff]  ;;  %v110_v12 = vld [vmem:[%s972_s1 + $0x260] sm:$0xff]  ;;  %v141_v14 = vld [vmem:[%s972_s1 + $0x358] sm:$0xff] }
  0x1b   :  { %197 = vmatpush.msra.mxu1 %v54_v47  ;;  %178 = vmatpush.msra.mxu0 %v37_v49  ;;  %v127_v13 = vld [vmem:[%s972_s1 + $0x2e8] sm:$0xff]  ;;  %v158_v15 = vld [vmem:[%s972_s1 + $0x3e0] sm:$0xff]  ;;  %v109_v16 = vld [vmem:[%s972_s1 + $0x258] sm:$0xff] }
  0x1c   :  { %238 = vmatpush.msra.mxu3 %v85_v50  ;;  %219 = vmatpush.msra.mxu2 %v68_v52  ;;  %v126_v17 = vld [vmem:[%s972_s1 + $0x2e0] sm:$0xff]  ;;  %v140_v18 = vld [vmem:[%s972_s1 + $0x350] sm:$0xff]  ;;  %v157_v19 = vld [vmem:[%s972_s1 + $0x3d8] sm:$0xff] }
  0x1d   :  { %198 = vmatpush.msra.mxu1 %v53_v51  ;;  %179 = vmatpush.msra.mxu0 %v36_v53  ;;  %v108_v20 = vld [vmem:[%s972_s1 + $0x250] sm:$0xff]  ;;  %v125_v21 = vld [vmem:[%s972_s1 + $0x2d8] sm:$0xff]  ;;  %v139_v22 = vld [vmem:[%s972_s1 + $0x348] sm:$0xff] }
  0x1e   :  { %239 = vmatpush.msra.mxu3 %v84_v54  ;;  %220 = vmatpush.msra.mxu2 %v67_v56  ;;  %v156_v23 = vld [vmem:[%s972_s1 + $0x3d0] sm:$0xff]  ;;  %v107_v24 = vld [vmem:[%s972_s1 + $0x248] sm:$0xff]  ;;  %v138_v26 = vld [vmem:[%s972_s1 + $0x340] sm:$0xff] }
  0x1f   :  { %199 = vmatpush.msra.mxu1 %v52_v55  ;;  %180 = vmatpush.msra.mxu0 %v35_v57  ;;  %v124_v25 = vld [vmem:[%s972_s1 + $0x2d0] sm:$0xff]  ;;  %v155_v27 = vld [vmem:[%s972_s1 + $0x3c8] sm:$0xff]  ;;  %v106_v28 = vld [vmem:[%s972_s1 + $0x240] sm:$0xff] }
  0x20   :  { %240 = vmatpush.msra.mxu3 %v83_v58  ;;  %221 = vmatpush.msra.mxu2 %v66_v60  ;;  %v123_v29 = vld [vmem:[%s972_s1 + $0x2c8] sm:$0xff]  ;;  %v137_v30 = vld [vmem:[%s972_s1 + $0x338] sm:$0xff]  ;;  %v154_v31 = vld [vmem:[%s972_s1 + $0x3c0] sm:$0xff] }
  0x21   :  { %200 = vmatpush.msra.mxu1 %v51_v59  ;;  %181 = vmatpush.msra.mxu0 %v34_v61  ;;  %v105_v32 = vld [vmem:[%s972_s1 + $0x238] sm:$0xff]  ;;  %v122_v33 = vld [vmem:[%s972_s1 + $0x2c0] sm:$0xff]  ;;  %v136_v34 = vld [vmem:[%s972_s1 + $0x330] sm:$0xff] }
  0x22   :  { %286 = vmatpush.msrb.mxu2 %v145_v62  ;;  %241 = vmatpush.msra.mxu3 %v82_v63  ;;  %v153_v35 = vld [vmem:[%s972_s1 + $0x3b8] sm:$0xff]  ;;  %v104_v36 = vld [vmem:[%s972_s1 + $0x230] sm:$0xff]  ;;  %v135_v38 = vld [vmem:[%s972_s1 + $0x328] sm:$0xff] }
  0x23   :  { %246 = vmatpush.msrb.mxu0 %v113_v0  ;;  %201 = vmatpush.msra.mxu1 %v50_v3  ;;  %v121_v37 = vld [vmem:[%s972_s1 + $0x2b8] sm:$0xff]  ;;  %v152_v39 = vld [vmem:[%s972_s1 + $0x3b0] sm:$0xff]  ;;  %v103_v40 = vld [vmem:[%s972_s1 + $0x228] sm:$0xff] }
  0x24   :  { %306 = vmatpush.msrb.mxu3 %v161_v1  ;;  %287 = vmatpush.msrb.mxu2 %v144_v2  ;;  %v120_v41 = vld [vmem:[%s972_s1 + $0x2b0] sm:$0xff]  ;;  %v134_v42 = vld [vmem:[%s972_s1 + $0x320] sm:$0xff]  ;;  %v151_v43 = vld [vmem:[%s972_s1 + $0x3a8] sm:$0xff] }
  0x25   :  { %247 = vmatpush.msrb.mxu0 %v112_v4  ;;  %266 = vmatpush.msrb.mxu1 %v129_v5  ;;  %v28_v44 = vld [vmem:[%s974_s0 + $0x10] sm:$0xff]  ;;  %v102_v45 = vld [vmem:[%s972_s1 + $0x220] sm:$0xff]  ;;  %v119_v46 = vld [vmem:[%s972_s1 + $0x2a8] sm:$0xff] }
  0x26   :  { %288 = vmatpush.msrb.mxu2 %v143_v6  ;;  %307 = vmatpush.msrb.mxu3 %v160_v7  ;;  %v133_v47 = vld [vmem:[%s972_s1 + $0x318] sm:$0xff]  ;;  %v150_v48 = vld [vmem:[%s972_s1 + $0x3a0] sm:$0xff]  ;;  %v132_v53 = vld [vmem:[%s972_s1 + $0x310] sm:$0xff] }
  0x27   :  { %248 = vmatpush.msrb.mxu0 %v111_v8  ;;  %267 = vmatpush.msrb.mxu1 %v128_v9  ;;  %v26_v49 = vld [vmem:[%s974_s0] sm:$0xff]  ;;  %v29_v50 = vld [vmem:[%s974_s0 + $0x18] sm:$0xff]  ;;  %v27_v55 = vld [vmem:[%s974_s0 + $0x8] sm:$0xff] }
  0x28   :  { %289 = vmatpush.msrb.mxu2 %v142_v10  ;;  %308 = vmatpush.msrb.mxu3 %v159_v11  ;;  %v101_v51 = vld [vmem:[%s972_s1 + $0x218] sm:$0xff]  ;;  %v118_v52 = vld [vmem:[%s972_s1 + $0x2a0] sm:$0xff]  ;;  %v100_v56 = vld [vmem:[%s972_s1 + $0x210] sm:$0xff] }
  0x29   :  { %249 = vmatpush.msrb.mxu0 %v110_v12  ;;  %268 = vmatpush.msrb.mxu1 %v127_v13  ;;  %v149_v54 = vld [vmem:[%s972_s1 + $0x398] sm:$0xff]  ;;  %v131_v58 = vld [vmem:[%s972_s1 + $0x308] sm:$0xff]  ;;  %v148_v59 = vld [vmem:[%s972_s1 + $0x390] sm:$0xff] }
  0x2a   :  { %290 = vmatpush.msrb.mxu2 %v141_v14  ;;  %309 = vmatpush.msrb.mxu3 %v158_v15  ;;  %v117_v57 = vld [vmem:[%s972_s1 + $0x298] sm:$0xff]  ;;  %v99_v60 = vld [vmem:[%s972_s1 + $0x208] sm:$0xff]  ;;  %v116_v61 = vld [vmem:[%s972_s1 + $0x290] sm:$0xff] }
  0x2b   :  { %250 = vmatpush.msrb.mxu0 %v109_v16  ;;  %269 = vmatpush.msrb.mxu1 %v126_v17  ;;  %v130_v62 = vld [vmem:[%s972_s1 + $0x300] sm:$0xff]  ;;  %v147_v63 = vld [vmem:[%s972_s1 + $0x388] sm:$0xff]  ;;  %v32_v0 = vld [vmem:[%s974_s0 + $0x30] sm:$0xff] }
  0x2c   :  { %291 = vmatpush.msrb.mxu2 %v140_v18  ;;  %310 = vmatpush.msrb.mxu3 %v157_v19  ;;  %v98_v1 = vld [vmem:[%s972_s1 + $0x200] sm:$0xff]  ;;  %v115_v2 = vld [vmem:[%s972_s1 + $0x288] sm:$0xff]  ;;  %v33_v5 = vld [vmem:[%s974_s0 + $0x38] sm:$0xff] }
  0x2d   :  { %251 = vmatpush.msrb.mxu0 %v108_v20  ;;  %270 = vmatpush.msrb.mxu1 %v125_v21  ;;  %v146_v3 = vld [vmem:[%s972_s1 + $0x380] sm:$0xff]  ;;  %v342_v7 = vld [vmem:[%s975_s3 + $0x78] sm:$0xff]  ;;  %v31_v8 = vld [vmem:[%s974_s0 + $0x28] sm:$0xff] }
  0x2e   :  { %292 = vmatpush.msrb.mxu2 %v139_v22  ;;  %311 = vmatpush.msrb.mxu3 %v156_v23  ;;  %v30_v4 = vld [vmem:[%s974_s0 + $0x20] sm:$0xff]  ;;  %v341_v9 = vld [vmem:[%s975_s3 + $0x70] sm:$0xff]  ;;  %v340_v10 = vld [vmem:[%s975_s3 + $0x68] sm:$0xff] }
  0x2f   :  { %252 = vmatpush.msrb.mxu0 %v107_v24  ;;  %271 = vmatpush.msrb.mxu1 %v124_v25  ;;  %v114_v6 = vld [vmem:[%s972_s1 + $0x280] sm:$0xff]  ;;  %v338_v12 = vld [vmem:[%s975_s3 + $0x58] sm:$0xff]  ;;  %v337_v13 = vld [vmem:[%s975_s3 + $0x50] sm:$0xff] }
  0x30   :  { %293 = vmatpush.msrb.mxu2 %v138_v26  ;;  %312 = vmatpush.msrb.mxu3 %v155_v27  ;;  %v339_v11 = vld [vmem:[%s975_s3 + $0x60] sm:$0xff]  ;;  %v336_v14 = vld [vmem:[%s975_s3 + $0x48] sm:$0xff]  ;;  %v334_v16 = vld [vmem:[%s975_s3 + $0x38] sm:$0xff] }
  0x31   :  { %253 = vmatpush.msrb.mxu0 %v106_v28  ;;  %272 = vmatpush.msrb.mxu1 %v123_v29  ;;  %v335_v15 = vld [vmem:[%s975_s3 + $0x40] sm:$0xff]  ;;  %v333_v17 = vld [vmem:[%s975_s3 + $0x30] sm:$0xff]  ;;  %v332_v18 = vld [vmem:[%s975_s3 + $0x28] sm:$0xff] }
  0x32   :  { %294 = vmatpush.msrb.mxu2 %v137_v30  ;;  %313 = vmatpush.msrb.mxu3 %v154_v31  ;;  %v331_v19 = vld [vmem:[%s975_s3 + $0x20] sm:$0xff]  ;;  %v330_v20 = vld [vmem:[%s975_s3 + $0x18] sm:$0xff]  ;;  %v329_v21 = vld [vmem:[%s975_s3 + $0x10] sm:$0xff] }
  0x33   :  { %254 = vmatpush.msrb.mxu0 %v105_v32  ;;  %273 = vmatpush.msrb.mxu1 %v122_v33  ;;  %v328_v22 = vld [vmem:[%s975_s3 + $0x8] sm:$0xff]  ;;  %v327_v23 = vld [vmem:[%s975_s3] sm:$0xff]  ;;  %v383_v24 = vld [vmem:[%s977_s5 + $0x78] sm:$0xff] }
  0x34   :  { %295 = vmatpush.msrb.mxu2 %v136_v34  ;;  %314 = vmatpush.msrb.mxu3 %v153_v35  ;;  %v382_v25 = vld [vmem:[%s977_s5 + $0x70] sm:$0xff]  ;;  %v381_v26 = vld [vmem:[%s977_s5 + $0x68] sm:$0xff]  ;;  %v380_v27 = vld [vmem:[%s977_s5 + $0x60] sm:$0xff] }
  0x35   :  { %255 = vmatpush.msrb.mxu0 %v104_v36  ;;  %274 = vmatpush.msrb.mxu1 %v121_v37  ;;  %v379_v28 = vld [vmem:[%s977_s5 + $0x58] sm:$0xff]  ;;  %v413_v29 = vld [vmem:[%s973_s2] ss:$0 sm:$0xff]  ;;  %v378_v30 = vld [vmem:[%s977_s5 + $0x50] sm:$0xff] }
  0x36   :  { %296 = vmatpush.msrb.mxu2 %v135_v38  ;;  %315 = vmatpush.msrb.mxu3 %v152_v39  ;;  %v377_v31 = vld [vmem:[%s977_s5 + $0x48] sm:$0xff]  ;;  %v376_v34 = vld [vmem:[%s977_s5 + $0x40] sm:$0xff]  ;;  %v375_v36 = vld [vmem:[%s977_s5 + $0x38] sm:$0xff] }
  0x37   :  { %256 = vmatpush.msrb.mxu0 %v103_v40  ;;  %275 = vmatpush.msrb.mxu1 %v120_v41  ;;  %v374_v39 = vld [vmem:[%s977_s5 + $0x30] sm:$0xff] }
  0x38   :  { %297 = vmatpush.msrb.mxu2 %v134_v42  ;;  %316 = vmatpush.msrb.mxu3 %v151_v43  ;;  %v373_v42 = vld [vmem:[%s977_s5 + $0x28] sm:$0xff] }
  0x39   :  { %222 = vmatmul.f32.vlgmr.msra.gmra.mxu2 %v28_v44  ;;  %257 = vmatpush.msrb.mxu0 %v102_v45  ;;  %v372_v44 = vld [vmem:[%s977_s5 + $0x20] sm:$0xff] }
  0x3a   :  { %276 = vmatpush.msrb.mxu1 %v119_v46  ;;  %298 = vmatpush.msrb.mxu2 %v133_v47  ;;  %v371_v47 = vld [vmem:[%s977_s5 + $0x18] sm:$0xff] }
  0x3b   :  { %317 = vmatpush.msrb.mxu3 %v150_v48  ;;  %182 = vmatmul.f32.vlgmr.msra.gmra.mxu0 %v26_v49 }
  0x3c   :  { %242 = vmatmul.f32.vlgmr.msra.gmra.mxu3 %v29_v50  ;;  %258 = vmatpush.msrb.mxu0 %v101_v51 }
  0x3d   :  { %277 = vmatpush.msrb.mxu1 %v118_v52  ;;  %299 = vmatpush.msrb.mxu2 %v132_v53 }
  0x3e   :  { %318 = vmatpush.msrb.mxu3 %v149_v54  ;;  %202 = vmatmul.f32.vlgmr.msra.gmra.mxu1 %v27_v55  ;;  %v370_v55 = vld [vmem:[%s977_s5 + $0x10] sm:$0xff] }
  0x3f   :  { %259 = vmatpush.msrb.mxu0 %v100_v56  ;;  %278 = vmatpush.msrb.mxu1 %v117_v57  ;;  %v369_v56 = vld [vmem:[%s977_s5 + $0x8] sm:$0xff]  ;;  %v368_v57 = vld [vmem:[%s977_s5] sm:$0xff] }
  0x40   :  { %300 = vmatpush.msrb.mxu2 %v131_v58  ;;  %319 = vmatpush.msrb.mxu3 %v148_v59  ;;  %v414_v58 = vld [vmem:[%s976_s4] ss:$0 sm:$0xff] }
  0x41   :  { %260 = vmatpush.msrb.mxu0 %v99_v60  ;;  %279 = vmatpush.msrb.mxu1 %v116_v61 }
  0x42   :  { %301 = vmatpush.msrb.mxu2 %v130_v62  ;;  %320 = vmatpush.msrb.mxu3 %v147_v63  ;;  %v415_v62 = vld [vmem:[%s978_s6] ss:$0 sm:$0xff] }
  0x43   :  { %302 = vmatmul.f32.vlgmr.msrb.gmra.mxu2 %v32_v0  ;;  %261 = vmatpush.msrb.mxu0 %v98_v1 }
  0x44   :  { %280 = vmatpush.msrb.mxu1 %v115_v2  ;;  %321 = vmatpush.msrb.mxu3 %v146_v3 }
  0x45   :  { %262 = vmatmul.f32.vlgmr.msrb.gmra.mxu0 %v30_v4  ;;  %322 = vmatmul.f32.vlgmr.msrb.gmra.mxu3 %v33_v5 }
  0x46   :  { %281 = vmatpush.msrb.mxu1 %v114_v6  ;;  %347 = vmatpush.msra.mxu0 %v342_v7 }
  0x47   :  { %282 = vmatmul.f32.vlgmr.msrb.gmra.mxu1 %v31_v8 }
  0x48   :  { %348 = vmatpush.msra.mxu0 %v341_v9  ;;  %388 = vmatpush.msra.mxu1 %v383_v24 }
  0x4a   :  { %349 = vmatpush.msra.mxu0 %v340_v10  ;;  %389 = vmatpush.msra.mxu1 %v382_v25 }
  0x4c   :  { %350 = vmatpush.msra.mxu0 %v339_v11  ;;  %390 = vmatpush.msra.mxu1 %v381_v26 }
  0x4e   :  { %351 = vmatpush.msra.mxu0 %v338_v12  ;;  %391 = vmatpush.msra.mxu1 %v380_v27 }
  0x50   :  { %352 = vmatpush.msra.mxu0 %v337_v13  ;;  %392 = vmatpush.msra.mxu1 %v379_v28 }
  0x52   :  { %353 = vmatpush.msra.mxu0 %v336_v14  ;;  %393 = vmatpush.msra.mxu1 %v378_v30 }
  0x54   :  { %354 = vmatpush.msra.mxu0 %v335_v15  ;;  %394 = vmatpush.msra.mxu1 %v377_v31 }
  0x56   :  { %355 = vmatpush.msra.mxu0 %v334_v16  ;;  %395 = vmatpush.msra.mxu1 %v376_v34 }
  0x58   :  { %356 = vmatpush.msra.mxu0 %v333_v17  ;;  %396 = vmatpush.msra.mxu1 %v375_v36 }
  0x5a   :  { %357 = vmatpush.msra.mxu0 %v332_v18  ;;  %397 = vmatpush.msra.mxu1 %v374_v39 }
  0x5c   :  { %358 = vmatpush.msra.mxu0 %v331_v19  ;;  %398 = vmatpush.msra.mxu1 %v373_v42 }
  0x5e   :  { %359 = vmatpush.msra.mxu0 %v330_v20  ;;  %399 = vmatpush.msra.mxu1 %v372_v44 }
  0x60   :  { %360 = vmatpush.msra.mxu0 %v329_v21  ;;  %400 = vmatpush.msra.mxu1 %v371_v47 }
  0x62   :  { %361 = vmatpush.msra.mxu0 %v328_v22  ;;  %401 = vmatpush.msra.mxu1 %v370_v55 }
  0x64   :  { %362 = vmatpush.msra.mxu0 %v327_v23  ;;  %402 = vmatpush.msra.mxu1 %v369_v56 }
  0x66   :  { %403 = vmatpush.msra.mxu1 %v368_v57 }
  0xb8   :  { %v183_v32 = vpop.f32.mrf.mxu0 }
  0xb9   :  { %v184_v33 = vadd.f32 %v413_v29, %v183_v32 }
  0xbb   :  { %v203_v35 = vpop.f32.mrf.mxu1 }
  0xbc   :  { %v204_v37 = vadd.f32 %v203_v35, %v184_v33  ;;  %v223_v38 = vpop.f32.mrf.mxu2 }
  0xbe   :  { %v224_v40 = vadd.f32 %v223_v38, %v204_v37 }
  0xbf   :  { %v243_v41 = vpop.f32.mrf.mxu3 }
  0xc0   :  { %v244_v43 = vadd.f32 %v243_v41, %v224_v40 }
  0xc2   :  { %v263_v45 = vpop.f32.mrf.mxu0 }
  0xc3   :  { %v264_v46 = vadd.f32 %v263_v45, %v244_v43 }
  0xc4   :  { %v283_v48 = vpop.f32.mrf.mxu1 }
  0xc5   :  { %v284_v49 = vadd.f32 %v283_v48, %v264_v46 }
  0xc6   :  { %v303_v50 = vpop.f32.mrf.mxu2 }
  0xc7   :  { %v304_v51 = vadd.f32 %v303_v50, %v284_v49 }
  0xc8   :  { %v323_v52 = vpop.f32.mrf.mxu3 }
  0xc9   :  { %v324_v53 = vadd.f32 %v323_v52, %v304_v51 }
  0xcb   :  { %v326_v54 = vmax.f32 %v324_v53, 0.0 }
  0xcd   :  { %363 = vmatmul.f32.vlgmr.msra.gmra.mxu0 %v326_v54 }
 0x14a   :  { %v364_v59 = vpop.f32.mrf.mxu0 }
 0x14b   :  { %v365_v60 = vadd.f32 %v414_v58, %v364_v59 }
 0x14d   :  { %v367_v61 = vmax.f32 %v365_v60, 0.0 }
 0x14f   :  { %404 = vmatmul.f32.vlgmr.msra.gmra.mxu1 %v367_v61 }
 0x1cc   :  { %v405_v63 = vpop.f32.mrf.mxu1 }
 0x1cd   :  { %v406_v0 = vadd.f32 %v415_v62, %v405_v63 }
 0x1cf   :  { %408 = vst [vmem:[%s979_s7] sm:$0xff] %v406_v0 }

// kernel: basset_forward.2
= control target key start
LH: loop header
LB: loop body
LE: loop exit
PB: predicated region body
PF: predicated region fallthrough
CT: control target
= control target key end

     0   :  { %s2120_s24 = smov 0   ;;  %s2740_s0 = inlined_call_operand.vmem [shape: f32[8,32,20], index: 0, kind: input, shape index: {}]   ;;  %s2741_s1 = inlined_call_operand.vmem [shape: f32[20,128], index: 1, kind: input, shape index: {}]   ;;  %s2742_s2 = inlined_call_operand.vmem [shape: f32[1,128], index: 2, kind: input, shape index: {}]   ;;  %s2743_s3 = inlined_call_operand.vmem [shape: f32[384,128], index: 3, kind: input, shape index: {}]   ;;  %s2744_s4 = inlined_call_operand.vmem [shape: f32[1,128], index: 4, kind: input, shape index: {}]   ;;  %s2745_s5 = inlined_call_operand.vmem [shape: f32[384,128], index: 5, kind: input, shape index: {}]   ;;  %s2746_s6 = inlined_call_operand.vmem [shape: f32[1,128], index: 6, kind: input, shape index: {}]   ;;  %s2747_s7 = inlined_call_operand.vmem [shape: f32[8,8,128], index: 7, kind: output, shape index: {}]  }
   0x1 LB: > { %s2028_s25 = sadd.s32 4294967295, %s2077_s24   ;;  %p2032_p0 = scmp.ge.s32.totalorder %s2077_s24, 1  ;;  %s2077_s24 = sphi %s2120_s24, %s17_s24  }
   0x2   : > { %p239_p1 = scmp.lt.s32.totalorder %s2077_s24, 3 }
   0x4   : > { %p240_p2 = pnand %p2032_p0, %p239_p1 }
   0x5   : > { %s2033_s30 = sshll.u32 (!%p240_p2), %s2028_s25, 2 }
   0x6   : > { %243 = sbr.rel (%p240_p2) target bundleno = 634 (0x27a), region = 48  ;;  %p273_p3 = scmp.lt.s32.totalorder (!%p240_p2), %s2033_s30, 7 }
   0xb   : > { %v303_v0 = vld [vmem:[%s2741_s1 + $0x10] sm:$0xf]  ;;  %vm357_vm0 = vcmask 1043456   ;;  %v302_v1 = vld [vmem:[%s2741_s1 + $0x8] sm:$0xff]  ;;  %v301_v2 = vld [vmem:[%s2741_s1] sm:$0xff]  ;;  %s2749_s30 = smov (!%p273_p3, %s2033_s30), 7 }
   0xc   : > { %2038 = vmatpush.msk.msra.mxu0 %vm357_vm0, %v303_v0  ;;  %s2057_s10 = sshll.u32 %s2749_s30, 5  ;;  %vm308_vm1 = vcmask 162816   ;;  %v1205_v16 = vld [vmem:[%s2743_s3 + $0xf8] sm:$0xff]  ;;  %v1204_v17 = vld [vmem:[%s2743_s3 + $0xf0] sm:$0xff]  ;;  %v1203_v18 = vld [vmem:[%s2743_s3 + $0xe8] sm:$0xff]  ;;  %v2079_v40 = vmov 0.0  }
   0xd   : > { %s2143_s13 = scalar_lea.vmem %s2740_s0, %s2057_s10  ;;  %1206 = vmatpush.msra.mxu1 %v1205_v16  ;;  %v1202_v19 = vld [vmem:[%s2743_s3 + $0xe0] sm:$0xff]  ;;  %v1181_v21 = vld [vmem:[%s2743_s3 + $0x78] sm:$0xff]  ;;  %v1180_v22 = vld [vmem:[%s2743_s3 + $0x70] sm:$0xff]  ;;  %1003 = vst [vmem:[#allocation2] sm:$0xff] %v2079_v40  ;;  %vm554_vm2 = vcmask 1041408   ;;  %vm1079_vm3 = vcmask 1041409  }
   0xe   : > { %375 = vmatpush.msra.mxu0 %v302_v1  ;;  %v285_v3 = vld [vmem:[%s2143_s13] sm:$0xff]  ;;  %v286_v4 = vld [vmem:[%s2143_s13 + $0x8] sm:$0xff]  ;;  %v287_v5 = vld [vmem:[%s2143_s13 + $0x10] sm:$0xff]  ;;  %1247 = vmatpush.msra.mxu2 %v1181_v21  ;;  %1004 = vst [vmem:[#allocation2 + $0x8] sm:$0xff] %v2079_v40  ;;  %vm1081_vm4 = vcmask 1042434   ;;  %vm1083_vm5 = vcmask 1043459  }
   0xf   : > { %v288_v6 = vld [vmem:[%s2143_s13 + $0x18] sm:$0xff]  ;;  %v289_v7 = vld [vmem:[%s2143_s13 + $0x20] sm:$0xff]  ;;  %v290_v8 = vld [vmem:[%s2143_s13 + $0x28] sm:$0xff]  ;;  %1207 = vmatpush.msra.mxu1 %v1204_v17  ;;  %1005 = vst [vmem:[#allocation2 + $0x10] sm:$0x3] %v2079_v40  ;;  %vm1085_vm6 = vcmask 1044484  }
  0x10   : > { %376 = vmatpush.msra.mxu0 %v301_v2  ;;  %v291_v9 = vld [vmem:[%s2143_s13 + $0x30] sm:$0xff]  ;;  %v292_v10 = vld [vmem:[%s2143_s13 + $0x38] sm:$0xff]  ;;  %v293_v11 = vld [vmem:[%s2143_s13 + $0x40] sm:$0xff]  ;;  %1248 = vmatpush.msra.mxu2 %v1180_v22  ;;  %1006 = vst [vmem:[#allocation2 + $0x18] sm:$0xff] %v2079_v40  ;;  %vm1087_vm7 = vcmask 1045509   ;;  %vm1089_vm8 = vcmask 1046534  }
  0x11   : > { %2039 = vmatmul.msk.f32.vlgmr.msra.gmra.mxu0 %vm308_vm1, %v285_v3  ;;  %v294_v12 = vld [vmem:[%s2143_s13 + $0x48] sm:$0xff]  ;;  %v295_v13 = vld [vmem:[%s2143_s13 + $0x50] sm:$0xff]  ;;  %v296_v14 = vld [vmem:[%s2143_s13 + $0x58] sm:$0xff]  ;;  %1208 = vmatpush.msra.mxu1 %v1203_v18  ;;  %1007 = vst [vmem:[#allocation2 + $0x20] sm:$0xff] %v2079_v40  ;;  %vm1091_vm9 = vcmask 1047559   ;;  %s2037_s27 = sshll.u32 %s2749_s30, 3 }
  0x12   : > { %v297_v15 = vld [vmem:[%s2143_s13 + $0x60] sm:$0xff]  ;;  %v298_v20 = vld [vmem:[%s2143_s13 + $0x68] sm:$0xff]  ;;  %v1201_v23 = vld [vmem:[%s2743_s3 + $0xd8] sm:$0xff]  ;;  %1008 = vst [vmem:[#allocation2 + $0x28] sm:$0x3] %v2079_v40  ;;  %s2677_s8 = scalar_lea.vmem %s2747_s7, %s2037_s27 }
  0x13   : > { %1209 = vmatpush.msra.mxu1 %v1202_v19  ;;  %v1179_v24 = vld [vmem:[%s2743_s3 + $0x68] sm:$0xff]  ;;  %v1200_v25 = vld [vmem:[%s2743_s3 + $0xd0] sm:$0xff]  ;;  %v1178_v26 = vld [vmem:[%s2743_s3 + $0x60] sm:$0xff]  ;;  %1009 = vst [vmem:[#allocation2 + $0x30] sm:$0xff] %v2079_v40 }
  0x14   : > { %1249 = vmatpush.msra.mxu2 %v1179_v24  ;;  %v1199_v27 = vld [vmem:[%s2743_s3 + $0xc8] sm:$0xff]  ;;  %v299_v28 = vld [vmem:[%s2143_s13 + $0x70] sm:$0xff]  ;;  %v1198_v29 = vld [vmem:[%s2743_s3 + $0xc0] sm:$0xff]  ;;  %1010 = vst [vmem:[#allocation2 + $0x38] sm:$0xff] %v2079_v40 }
  0x15   : > { %1210 = vmatpush.msra.mxu1 %v1201_v23  ;;  %v1177_v30 = vld [vmem:[%s2743_s3 + $0x58] sm:$0xff]  ;;  %v1176_v31 = vld [vmem:[%s2743_s3 + $0x50] sm:$0xff]  ;;  %v1175_v33 = vld [vmem:[%s2743_s3 + $0x48] sm:$0xff]  ;;  %1011 = vst [vmem:[#allocation2 + $0x40] sm:$0x3] %v2079_v40 }
  0x16   : > { %1250 = vmatpush.msra.mxu2 %v1178_v26  ;;  %v1197_v32 = vld [vmem:[%s2743_s3 + $0xb8] sm:$0xff]  ;;  %v1196_v34 = vld [vmem:[%s2743_s3 + $0xb0] sm:$0xff]  ;;  %v1174_v36 = vld [vmem:[%s2743_s3 + $0x40] sm:$0xff]  ;;  %1012 = vst [vmem:[#allocation2 + $0x48] sm:$0xff] %v2079_v40 }
  0x17   : > { %1211 = vmatpush.msra.mxu1 %v1200_v25  ;;  %v300_v35 = vld [vmem:[%s2143_s13 + $0x78] sm:$0xff]  ;;  %v1195_v37 = vld [vmem:[%s2743_s3 + $0xa8] sm:$0xff]  ;;  %v1194_v38 = vld [vmem:[%s2743_s3 + $0xa0] sm:$0xff]  ;;  %1013 = vst [vmem:[#allocation2 + $0x50] sm:$0xff] %v2079_v40 }
  0x18   : > { %1251 = vmatpush.msra.mxu2 %v1177_v30  ;;  %v2240_v39 = vld [vmem:[%s2742_s2] ss:$0 sm:$0xff]  ;;  %v1173_v41 = vld [vmem:[%s2743_s3 + $0x38] sm:$0xff]  ;;  %v1172_v43 = vld [vmem:[%s2743_s3 + $0x30] sm:$0xff]  ;;  %1014 = vst [vmem:[#allocation2 + $0x58] sm:$0x3] %v2079_v40 }
  0x19   : > { %2040 = vmatmul.msk.f32.gmra.mxu0 %vm308_vm1, %v286_v4  ;;  %1212 = vmatpush.msra.mxu1 %v1199_v27  ;;  %v1311_v42 = vld [vmem:[%s2743_s3 + $0x178] sm:$0xff]  ;;  %v1310_v44 = vld [vmem:[%s2743_s3 + $0x170] sm:$0xff]  ;;  %v1171_v48 = vld [vmem:[%s2743_s3 + $0x28] sm:$0xff]  ;;  %1381 = vst [vmem:[#allocation3] sm:$0xff] %v2079_v40 }
  0x1a   : > { %1252 = vmatpush.msra.mxu2 %v1176_v31  ;;  %1312 = vmatpush.msra.mxu3 %v1311_v42  ;;  %v1193_v45 = vld [vmem:[%s2743_s3 + $0x98] sm:$0xff]  ;;  %v1309_v49 = vld [vmem:[%s2743_s3 + $0x168] sm:$0xff]  ;;  %v1192_v50 = vld [vmem:[%s2743_s3 + $0x90] sm:$0xff]  ;;  %1382 = vst [vmem:[#allocation3 + $0x8] sm:$0xff] %v2079_v40 }
  0x1b   : > { %1213 = vmatpush.msra.mxu1 %v1198_v29  ;;  %v1170_v52 = vld [vmem:[%s2743_s3 + $0x20] sm:$0xff]  ;;  %v1191_v54 = vld [vmem:[%s2743_s3 + $0x88] sm:$0xff]  ;;  %v1169_v0 = vld [vmem:[%s2743_s3 + $0x18] sm:$0xff]  ;;  %1383 = vst [vmem:[#allocation3 + $0x10] sm:$0x3] %v2079_v40 }
  0x1c   : > { %1253 = vmatpush.msra.mxu2 %v1175_v33  ;;  %1313 = vmatpush.msra.mxu3 %v1310_v44  ;;  %v1308_v53 = vld [vmem:[%s2743_s3 + $0x160] sm:$0xff]  ;;  %v1307_v1 = vld [vmem:[%s2743_s3 + $0x158] sm:$0xff]  ;;  %v1305_v16 = vld [vmem:[%s2743_s3 + $0x148] sm:$0xff]  ;;  %1384 = vst [vmem:[#allocation3 + $0x18] sm:$0xff] %v2079_v40 }
  0x1d   : > { %1214 = vmatpush.msra.mxu1 %v1197_v32  ;;  %v1190_v60 = vld [vmem:[%s2743_s3 + $0x80] sm:$0xff]  ;;  %1385 = vst [vmem:[#allocation3 + $0x20] sm:$0xff] %v2079_v40 }
  0x1e   : > { %1254 = vmatpush.msra.mxu2 %v1174_v36  ;;  %1314 = vmatpush.msra.mxu3 %v1309_v49  ;;  %v1166_v25 = vld [vmem:[%s2743_s3] sm:$0xff]  ;;  %1386 = vst [vmem:[#allocation3 + $0x28] sm:$0x3] %v2079_v40 }
  0x1f   : > { %1215 = vmatpush.msra.mxu1 %v1196_v34  ;;  %v1304_v30 = vld [vmem:[%s2743_s3 + $0x140] sm:$0xff]  ;;  %1387 = vst [vmem:[#allocation3 + $0x30] sm:$0xff] %v2079_v40 }
  0x20   : > { %1255 = vmatpush.msra.mxu2 %v1173_v41  ;;  %1315 = vmatpush.msra.mxu3 %v1308_v53  ;;  %1388 = vst [vmem:[#allocation3 + $0x38] sm:$0xff] %v2079_v40 }
  0x21   : > { %2041 = vmatmul.msk.f32.gmra.mxu0 %vm308_vm1, %v287_v5  ;;  %1216 = vmatpush.msra.mxu1 %v1195_v37  ;;  %1389 = vst [vmem:[#allocation3 + $0x40] sm:$0x3] %v2079_v40 }
  0x22   : > { %1256 = vmatpush.msra.mxu2 %v1172_v43  ;;  %1316 = vmatpush.msra.mxu3 %v1307_v1  ;;  %1390 = vst [vmem:[#allocation3 + $0x48] sm:$0xff] %v2079_v40 }
  0x23   : > { %1217 = vmatpush.msra.mxu1 %v1194_v38  ;;  %1391 = vst [vmem:[#allocation3 + $0x50] sm:$0xff] %v2079_v40 }
  0x24   : > { %1257 = vmatpush.msra.mxu2 %v1171_v48  ;;  %1392 = vst [vmem:[#allocation3 + $0x58] sm:$0x3] %v2079_v40 }
  0x25   : > { %1218 = vmatpush.msra.mxu1 %v1193_v45  ;;  %v1303_v45 = vld [vmem:[%s2743_s3 + $0x138] sm:$0xff] }
  0x26   : > { %1258 = vmatpush.msra.mxu2 %v1170_v52 }
  0x27   : > { %1219 = vmatpush.msra.mxu1 %v1192_v50 }
  0x28   : > { %1259 = vmatpush.msra.mxu2 %v1169_v0 }
  0x29   : > { %2042 = vmatmul.msk.f32.gmra.mxu0 %vm308_vm1, %v288_v6  ;;  %1220 = vmatpush.msra.mxu1 %v1191_v54  ;;  %v1302_v54 = vld [vmem:[%s2743_s3 + $0x130] sm:$0xff] }
  0x2b   : > { %1221 = vmatpush.msra.mxu1 %v1190_v60 }
  0x31   : > { %2043 = vmatmul.msk.f32.gmra.mxu0 %vm308_vm1, %v289_v7 }
  0x39   : > { %2044 = vmatmul.msk.f32.gmra.mxu0 %vm308_vm1, %v290_v8  ;;  %v1168_v8 = vld [vmem:[%s2743_s3 + $0x10] sm:$0xff] }
  0x3a   : > { %1260 = vmatpush.msra.mxu2 %v1168_v8 }
  0x41   : > { %2045 = vmatmul.msk.f32.gmra.mxu0 %vm308_vm1, %v291_v9  ;;  %v1306_v9 = vld [vmem:[%s2743_s3 + $0x150] sm:$0xff] }
  0x42   : > { %1317 = vmatpush.msra.mxu3 %v1306_v9 }
  0x44   : > { %1318 = vmatpush.msra.mxu3 %v1305_v16  ;;  %v1299_v16 = vld [vmem:[%s2743_s3 + $0x118] sm:$0xff] }
  0x46   : > { %1319 = vmatpush.msra.mxu3 %v1304_v30 }
  0x48   : > { %1320 = vmatpush.msra.mxu3 %v1303_v45 }
  0x49   : > { %2046 = vmatmul.msk.f32.gmra.mxu0 %vm308_vm1, %v292_v10 }
  0x4a   : > { %1321 = vmatpush.msra.mxu3 %v1302_v54 }
  0x51   : > { %2047 = vmatmul.msk.f32.gmra.mxu0 %vm308_vm1, %v293_v11 }
  0x59   : > { %2048 = vmatmul.msk.f32.gmra.mxu0 %vm308_vm1, %v294_v12 }
  0x61   : > { %2049 = vmatmul.msk.f32.gmra.mxu0 %vm308_vm1, %v295_v13 }
  0x69   : > { %2050 = vmatmul.msk.f32.gmra.mxu0 %vm308_vm1, %v296_v14 }
  0x71   : > { %2051 = vmatmul.msk.f32.gmra.mxu0 %vm308_vm1, %v297_v15  ;;  %v1167_v15 = vld [vmem:[%s2743_s3 + $0x8] sm:$0xff] }
  0x72   : > { %1261 = vmatpush.msra.mxu2 %v1167_v15 }
  0x74   : > { %1262 = vmatpush.msra.mxu2 %v1166_v25  ;;  %v1298_v25 = vld [vmem:[%s2743_s3 + $0x110] sm:$0xff] }
  0x79   : > { %2052 = vmatmul.msk.f32.gmra.mxu0 %vm308_vm1, %v298_v20 }
  0x81   : > { %2053 = vmatmul.msk.f32.gmra.mxu0 %vm308_vm1, %v299_v28 }
  0x89   : > { %2054 = vmatmul.msk.f32.gmra.mxu0 %vm308_vm1, %v300_v35 }
  0x8e   : > { %v378_v46 = vpop.f32.mrf.mxu0 }
  0x8f   : > { %v379_v47 = vadd.f32 %v2240_v39, %v378_v46 }
  0x91   : > { %v426_v51 = vmax.f32 %v379_v47, 0.0 }
  0x93   : > { %v458_v55 = vrot.slane %v426_v51, 2  ;;  %v459_v56 = vrot.slane %v426_v51, 4  ;;  %v460_v57 = vrot.slane %v426_v51, 6  ;;  %v555_v58 = vsel %vm554_vm2, %v426_v51, -inf }
  0x94   : > { %v556_v59 = vrot.slane %v555_v58, 4 }
  0x95   : > { %v562_v61 = vsel %vm554_vm2, %v458_v55, -inf  ;;  %v569_v62 = vsel %vm554_vm2, %v459_v56, -inf  ;;  %v576_v63 = vsel %vm554_vm2, %v460_v57, -inf }
  0x96   : > { %v557_v2 = vmax.f32 %v555_v58, %v556_v59  ;;  %v563_v3 = vrot.slane %v562_v61, 4  ;;  %v570_v4 = vrot.slane %v569_v62, 4  ;;  %v577_v5 = vrot.slane %v576_v63, 4  ;;  %v381_v6 = vpop.f32.mrf.mxu0 }
  0x97   : > { %v382_v7 = vadd.f32 %v2240_v39, %v381_v6  ;;  %v1300_v6 = vld [vmem:[%s2743_s3 + $0x120] sm:$0xff] }
  0x98   : > { %v558_v10 = vrot.slane %v557_v2, 2  ;;  %v564_v11 = vmax.f32 %v562_v61, %v563_v3  ;;  %v571_v12 = vmax.f32 %v569_v62, %v570_v4  ;;  %v578_v13 = vmax.f32 %v576_v63, %v577_v5  ;;  %v1301_v62 = vld [vmem:[%s2743_s3 + $0x128] sm:$0xff] }
  0x99   : > { %v427_v14 = vmax.f32 %v382_v7, 0.0  ;;  %1322 = vmatpush.msra.mxu3 %v1301_v62 }
  0x9a   : > { %v559_v17 = vmax.f32 %v557_v2, %v558_v10  ;;  %v565_v18 = vrot.slane %v564_v11, 2  ;;  %v572_v19 = vrot.slane %v571_v12, 2  ;;  %v579_v20 = vrot.slane %v578_v13, 2 }
  0x9b   : > { %v461_v21 = vrot.slane %v427_v14, 2  ;;  %v462_v22 = vrot.slane %v427_v14, 4  ;;  %v463_v23 = vrot.slane %v427_v14, 6  ;;  %v583_v24 = vsel %vm554_vm2, %v427_v14, -inf  ;;  %1323 = vmatpush.msra.mxu3 %v1300_v6 }
  0x9c   : > { %v560_v26 = vrot.slane %v559_v17, 1  ;;  %v566_v27 = vmax.f32 %v564_v11, %v565_v18  ;;  %v573_v28 = vmax.f32 %v571_v12, %v572_v19  ;;  %v580_v29 = vmax.f32 %v578_v13, %v579_v20 }
  0x9d   : > { %v584_v31 = vrot.slane %v583_v24, 4  ;;  %v590_v32 = vsel %vm554_vm2, %v461_v21, -inf  ;;  %v597_v33 = vsel %vm554_vm2, %v462_v22, -inf  ;;  %v604_v34 = vsel %vm554_vm2, %v463_v23, -inf  ;;  %1324 = vmatpush.msra.mxu3 %v1299_v16 }
  0x9e   : > { %v567_v35 = vrot.slane %v566_v27, 1  ;;  %v574_v36 = vrot.slane %v573_v28, 1  ;;  %v581_v37 = vrot.slane %v580_v29, 1  ;;  %v384_v38 = vpop.f32.mrf.mxu0  ;;  %v591_v42 = vrot.slane %v590_v32, 4 }
  0x9f   : > { %v585_v41 = vmax.f32 %v583_v24, %v584_v31  ;;  %v598_v43 = vrot.slane %v597_v33, 4  ;;  %v605_v44 = vrot.slane %v604_v34, 4  ;;  %v561_v46 = vmax.f32 %v559_v17, %v560_v26  ;;  %1325 = vmatpush.msra.mxu3 %v1298_v25 }
  0xa0   : > { %v568_v47 = vmax.f32 %v566_v27, %v567_v35  ;;  %v575_v48 = vmax.f32 %v573_v28, %v574_v36  ;;  %v385_v49 = vadd.f32 %v2240_v39, %v384_v38  ;;  %v592_v51 = vmax.f32 %v590_v32, %v591_v42 }
  0xa1   : > { %v586_v50 = vrot.slane %v585_v41, 2  ;;  %v599_v52 = vmax.f32 %v597_v33, %v598_v43  ;;  %v606_v53 = vmax.f32 %v604_v34, %v605_v44  ;;  %v582_v55 = vmax.f32 %v580_v29, %v581_v37  ;;  %v1297_v33 = vld [vmem:[%s2743_s3 + $0x108] sm:$0xff]  ;;  %v1296_v43 = vld [vmem:[%s2743_s3 + $0x100] sm:$0xff] }
  0xa2   : > { %v1080_v56 = vsel %vm1079_vm3, %v568_v47, %v561_v46  ;;  %v428_v57 = vmax.f32 %v385_v49, 0.0  ;;  %v593_v60 = vrot.slane %v592_v51, 2  ;;  %1326 = vmatpush.msra.mxu3 %v1297_v33 }
  0xa3   : > { %v1082_v58 = vsel %vm1081_vm4, %v575_v48, %v1080_v56  ;;  %v587_v59 = vmax.f32 %v585_v41, %v586_v50  ;;  %v600_v61 = vrot.slane %v599_v52, 2  ;;  %v607_v0 = vrot.slane %v606_v53, 2 }
  0xa4   : > { %v1084_v63 = vsel %vm1083_vm5, %v582_v55, %v1082_v58  ;;  %v464_v1 = vrot.slane %v428_v57, 2  ;;  %v465_v2 = vrot.slane %v428_v57, 4  ;;  %v594_v4 = vmax.f32 %v592_v51, %v593_v60  ;;  %1327 = vmatpush.msra.mxu3 %v1296_v43 }
  0xa5   : > { %v588_v3 = vrot.slane %v587_v59, 1  ;;  %v601_v5 = vmax.f32 %v599_v52, %v600_v61  ;;  %v466_v40 = vrot.slane %v428_v57, 6  ;;  %v608_v7 = vmax.f32 %v606_v53, %v607_v0 }
  0xa6   : > { %v611_v8 = vsel %vm554_vm2, %v428_v57, -inf  ;;  %v618_v9 = vsel %vm554_vm2, %v464_v1, -inf  ;;  %v625_v10 = vsel %vm554_vm2, %v465_v2, -inf  ;;  %v387_v11 = vpop.f32.mrf.mxu0  ;;  %v595_v13 = vrot.slane %v594_v4, 1 }
  0xa7   : > { %v589_v12 = vmax.f32 %v587_v59, %v588_v3  ;;  %v602_v14 = vrot.slane %v601_v5, 1  ;;  %v612_v15 = vrot.slane %v611_v8, 4  ;;  %v609_v17 = vrot.slane %v608_v7, 1 }
  0xa8   : > { %v619_v18 = vrot.slane %v618_v9, 4  ;;  %v626_v19 = vrot.slane %v625_v10, 4  ;;  %v632_v20 = vsel %vm554_vm2, %v466_v40, -inf  ;;  %v596_v21 = vmax.f32 %v594_v4, %v595_v13 }
  0xa9   : > { %v603_v22 = vmax.f32 %v601_v5, %v602_v14  ;;  %v1086_v23 = vsel %vm1085_vm6, %v589_v12, %v1084_v63  ;;  %v613_v24 = vmax.f32 %v611_v8, %v612_v15  ;;  %v633_v28 = vrot.slane %v632_v20, 4 }
  0xaa   : > { %v620_v26 = vmax.f32 %v618_v9, %v619_v18  ;;  %v627_v27 = vmax.f32 %v625_v10, %v626_v19  ;;  %v610_v29 = vmax.f32 %v608_v7, %v609_v17  ;;  %v1088_v30 = vsel %vm1087_vm7, %v596_v21, %v1086_v23 }
  0xab   : > { %v614_v31 = vrot.slane %v613_v24, 2  ;;  %v388_v32 = vadd.f32 %v2240_v39, %v387_v11  ;;  %v1090_v34 = vsel %vm1089_vm8, %v603_v22, %v1088_v30  ;;  %v634_v37 = vmax.f32 %v632_v20, %v633_v28 }
  0xac   : > { %v621_v35 = vrot.slane %v620_v26, 2  ;;  %v628_v36 = vrot.slane %v627_v27, 2  ;;  %v1092_v38 = vsel %vm1091_vm9, %v610_v29, %v1090_v34 }
  0xad   : > { %v615_v41 = vmax.f32 %v613_v24, %v614_v31  ;;  %v429_v42 = vmax.f32 %v388_v32, 0.0  ;;  %1150 = vst [vmem:[#allocation2 + $0x1] sm:$0xff] %v1092_v38  ;;  %v635_v46 = vrot.slane %v634_v37, 2  ;;  %1222 = vmatmul.f32.vlgmr.msra.gmra.mxu1 %v1092_v38 }
  0xae   : > { %v622_v44 = vmax.f32 %v620_v26, %v621_v35  ;;  %v629_v45 = vmax.f32 %v627_v27, %v628_v36  ;;  %v390_v47 = vpop.f32.mrf.mxu0 }
  0xaf   : > { %v616_v48 = vrot.slane %v615_v41, 1  ;;  %v467_v49 = vrot.slane %v429_v42, 2  ;;  %v468_v50 = vrot.slane %v429_v42, 4  ;;  %v469_v51 = vrot.slane %v429_v42, 6 }
  0xb0   : > { %v623_v52 = vrot.slane %v622_v44, 1  ;;  %v630_v53 = vrot.slane %v629_v45, 1  ;;  %v636_v54 = vmax.f32 %v634_v37, %v635_v46  ;;  %v639_v55 = vsel %vm554_vm2, %v429_v42, -inf }
  0xb1   : > { %v617_v56 = vmax.f32 %v615_v41, %v616_v48  ;;  %v640_v57 = vrot.slane %v639_v55, 4  ;;  %v646_v58 = vsel %vm554_vm2, %v467_v49, -inf  ;;  %v653_v59 = vsel %vm554_vm2, %v468_v50, -inf }
  0xb2   : > { %v624_v60 = vmax.f32 %v622_v44, %v623_v52  ;;  %v631_v61 = vmax.f32 %v629_v45, %v630_v53  ;;  %v637_v62 = vrot.slane %v636_v54, 1  ;;  %v647_v63 = vrot.slane %v646_v58, 4 }
  0xb3   : > { %v641_v0 = vmax.f32 %v639_v55, %v640_v57  ;;  %v654_v1 = vrot.slane %v653_v59, 4  ;;  %v660_v2 = vsel %vm554_vm2, %v469_v51, -inf  ;;  %v391_v3 = vadd.f32 %v2240_v39, %v390_v47 }
  0xb4   : > { %v638_v4 = vmax.f32 %v636_v54, %v637_v62  ;;  %v1093_v5 = vsel %vm1079_vm3, %v624_v60, %v617_v56  ;;  %v648_v40 = vmax.f32 %v646_v58, %v647_v63  ;;  %v661_v6 = vrot.slane %v660_v2, 4  ;;  %v1158_v11 = vld [vmem:[#allocation2] sm:$0xff] }
  0xb5   : > { %v1094_v7 = vsel %vm1081_vm4, %v631_v61, %v1093_v5  ;;  %v642_v8 = vrot.slane %v641_v0, 2  ;;  %v655_v9 = vmax.f32 %v653_v59, %v654_v1  ;;  %v430_v10 = vmax.f32 %v391_v3, 0.0  ;;  %1263 = vmatmul.f32.vlgmr.msra.gmra.mxu2 %v1158_v11 }
  0xb6   : > { %v1095_v12 = vsel %vm1083_vm5, %v638_v4, %v1094_v7  ;;  %v649_v13 = vrot.slane %v648_v40, 2  ;;  %v662_v14 = vmax.f32 %v660_v2, %v661_v6  ;;  %v393_v15 = vpop.f32.mrf.mxu0 }
  0xb7   : > { %v643_v16 = vmax.f32 %v641_v0, %v642_v8  ;;  %v656_v17 = vrot.slane %v655_v9, 2  ;;  %v470_v18 = vrot.slane %v430_v10, 2  ;;  %v471_v19 = vrot.slane %v430_v10, 4 }
  0xb8   : > { %v650_v20 = vmax.f32 %v648_v40, %v649_v13  ;;  %v663_v21 = vrot.slane %v662_v14, 2  ;;  %v472_v22 = vrot.slane %v430_v10, 6  ;;  %v667_v23 = vsel %vm554_vm2, %v430_v10, -inf }
  0xb9   : > { %v644_v24 = vrot.slane %v643_v16, 1  ;;  %v657_v25 = vmax.f32 %v655_v9, %v656_v17  ;;  %v668_v26 = vrot.slane %v667_v23, 4  ;;  %v674_v27 = vsel %vm554_vm2, %v470_v18, -inf }
  0xba   : > { %v651_v28 = vrot.slane %v650_v20, 1  ;;  %v664_v29 = vmax.f32 %v662_v14, %v663_v21  ;;  %v675_v30 = vrot.slane %v674_v27, 4  ;;  %v681_v31 = vsel %vm554_vm2, %v471_v19, -inf }
  0xbb   : > { %v645_v32 = vmax.f32 %v643_v16, %v644_v24  ;;  %v658_v33 = vrot.slane %v657_v25, 1  ;;  %v669_v34 = vmax.f32 %v667_v23, %v668_v26  ;;  %v682_v35 = vrot.slane %v681_v31, 4 }
  0xbc   : > { %v652_v36 = vmax.f32 %v650_v20, %v651_v28  ;;  %v665_v37 = vrot.slane %v664_v29, 1  ;;  %v676_v38 = vmax.f32 %v674_v27, %v675_v30  ;;  %v688_v41 = vsel %vm554_vm2, %v472_v22, -inf }
  0xbd   : > { %v659_v42 = vmax.f32 %v657_v25, %v658_v33  ;;  %v1096_v43 = vsel %vm1085_vm6, %v645_v32, %v1095_v12  ;;  %v670_v44 = vrot.slane %v669_v34, 2  ;;  %v683_v45 = vmax.f32 %v681_v31, %v682_v35 }
  0xbe   : > { %v666_v46 = vmax.f32 %v664_v29, %v665_v37  ;;  %v1097_v47 = vsel %vm1087_vm7, %v652_v36, %v1096_v43  ;;  %v677_v48 = vrot.slane %v676_v38, 2  ;;  %v689_v49 = vrot.slane %v688_v41, 4  ;;  %v396_v50 = vpop.f32.mrf.mxu0 }
  0xbf   : > { %v1098_v51 = vsel %vm1089_vm8, %v659_v42, %v1097_v47  ;;  %v671_v52 = vmax.f32 %v669_v34, %v670_v44  ;;  %v684_v53 = vrot.slane %v683_v45, 2  ;;  %v394_v54 = vadd.f32 %v2240_v39, %v393_v15 }
  0xc0   : > { %v1099_v55 = vsel %vm1091_vm9, %v666_v46, %v1098_v51  ;;  %v678_v56 = vmax.f32 %v676_v38, %v677_v48  ;;  %v690_v57 = vmax.f32 %v688_v41, %v689_v49  ;;  %v397_v58 = vadd.f32 %v2240_v39, %v396_v50 }
  0xc1   : > { %1151 = vst [vmem:[#allocation2 + $0x9] sm:$0xff] %v1099_v55  ;;  %v672_v59 = vrot.slane %v671_v52, 1  ;;  %v685_v60 = vmax.f32 %v683_v45, %v684_v53  ;;  %v431_v61 = vmax.f32 %v394_v54, 0.0  ;;  %1225 = vmatmul.f32.gmra.mxu1 %v1099_v55 }
  0xc2   : > { %v679_v62 = vrot.slane %v678_v56, 1  ;;  %v691_v63 = vrot.slane %v690_v57, 2  ;;  %v432_v0 = vmax.f32 %v397_v58, 0.0 }
  0xc3   : > { %v673_v1 = vmax.f32 %v671_v52, %v672_v59  ;;  %v686_v2 = vrot.slane %v685_v60, 1  ;;  %v473_v3 = vrot.slane %v431_v61, 2  ;;  %v474_v4 = vrot.slane %v431_v61, 4 }
  0xc4   : > { %v680_v5 = vmax.f32 %v678_v56, %v679_v62  ;;  %v692_v40 = vmax.f32 %v690_v57, %v691_v63  ;;  %v475_v6 = vrot.slane %v431_v61, 6  ;;  %v695_v7 = vsel %vm554_vm2, %v431_v61, -inf }
  0xc5   : > { %v687_v8 = vmax.f32 %v685_v60, %v686_v2  ;;  %v696_v9 = vrot.slane %v695_v7, 4  ;;  %v702_v10 = vsel %vm554_vm2, %v473_v3, -inf  ;;  %v709_v11 = vsel %vm554_vm2, %v474_v4, -inf }
  0xc6   : > { %v693_v12 = vrot.slane %v692_v40, 1  ;;  %v1100_v13 = vsel %vm1079_vm3, %v680_v5, %v673_v1  ;;  %v703_v14 = vrot.slane %v702_v10, 4  ;;  %v710_v15 = vrot.slane %v709_v11, 4  ;;  %v399_v16 = vpop.f32.mrf.mxu0 }
  0xc7   : > { %v1101_v17 = vsel %vm1081_vm4, %v687_v8, %v1100_v13  ;;  %v697_v18 = vmax.f32 %v695_v7, %v696_v9  ;;  %v716_v19 = vsel %vm554_vm2, %v475_v6, -inf  ;;  %v476_v20 = vrot.slane %v432_v0, 2 }
  0xc8   : > { %v694_v21 = vmax.f32 %v692_v40, %v693_v12  ;;  %v704_v22 = vmax.f32 %v702_v10, %v703_v14  ;;  %v711_v23 = vmax.f32 %v709_v11, %v710_v15  ;;  %v717_v24 = vrot.slane %v716_v19, 4  ;;  %v1159_v25 = vld [vmem:[#allocation2 + $0x8] sm:$0xff] }
  0xc9   : > { %v1288_v26 = vld [vmem:[#allocation2 + $0x2] sm:$0xff]  ;;  %v698_v27 = vrot.slane %v697_v18, 2  ;;  %v477_v28 = vrot.slane %v432_v0, 4  ;;  %v478_v29 = vrot.slane %v432_v0, 6  ;;  %v723_v30 = vsel %vm554_vm2, %v432_v0, -inf  ;;  %1266 = vmatmul.f32.gmra.mxu2 %v1159_v25  ;;  %v1289_v62 = vld [vmem:[#allocation2 + $0xa] sm:$0xff] }
  0xca   : > { %1328 = vmatmul.f32.vlgmr.msra.gmra.mxu3 %v1288_v26  ;;  %v1102_v31 = vsel %vm1083_vm5, %v694_v21, %v1101_v17  ;;  %v705_v32 = vrot.slane %v704_v22, 2  ;;  %v712_v33 = vrot.slane %v711_v23, 2  ;;  %v718_v34 = vmax.f32 %v716_v19, %v717_v24 }
  0xcb   : > { %v699_v35 = vmax.f32 %v697_v18, %v698_v27  ;;  %v724_v36 = vrot.slane %v723_v30, 4  ;;  %v730_v37 = vsel %vm554_vm2, %v476_v20, -inf  ;;  %v737_v38 = vsel %vm554_vm2, %v477_v28, -inf }
  0xcc   : > { %v706_v41 = vmax.f32 %v704_v22, %v705_v32  ;;  %v713_v42 = vmax.f32 %v711_v23, %v712_v33  ;;  %v719_v43 = vrot.slane %v718_v34, 2  ;;  %v731_v44 = vrot.slane %v730_v37, 4 }
  0xcd   : > { %v700_v45 = vrot.slane %v699_v35, 1  ;;  %v725_v46 = vmax.f32 %v723_v30, %v724_v36  ;;  %v738_v47 = vrot.slane %v737_v38, 4  ;;  %v744_v48 = vsel %vm554_vm2, %v478_v29, -inf }
  0xce   : > { %v707_v49 = vrot.slane %v706_v41, 1  ;;  %v714_v50 = vrot.slane %v713_v42, 1  ;;  %v720_v51 = vmax.f32 %v718_v34, %v719_v43  ;;  %v732_v52 = vmax.f32 %v730_v37, %v731_v44  ;;  %v402_v53 = vpop.f32.mrf.mxu0 }
  0xcf   : > { %v701_v54 = vmax.f32 %v699_v35, %v700_v45  ;;  %v726_v55 = vrot.slane %v725_v46, 2  ;;  %v739_v56 = vmax.f32 %v737_v38, %v738_v47  ;;  %v745_v57 = vrot.slane %v744_v48, 4 }
  0xd0   : > { %v708_v58 = vmax.f32 %v706_v41, %v707_v49  ;;  %v715_v59 = vmax.f32 %v713_v42, %v714_v50  ;;  %v721_v60 = vrot.slane %v720_v51, 1  ;;  %v733_v61 = vrot.slane %v732_v52, 2 }
  0xd1   : > { %v1103_v63 = vsel %vm1085_vm6, %v701_v54, %v1102_v31  ;;  %v727_v0 = vmax.f32 %v725_v46, %v726_v55  ;;  %v740_v1 = vrot.slane %v739_v56, 2  ;;  %v746_v2 = vmax.f32 %v744_v48, %v745_v57 }
  0xd2   : > { %1331 = vmatmul.f32.gmra.mxu3 %v1289_v62  ;;  %v722_v3 = vmax.f32 %v720_v51, %v721_v60  ;;  %v1104_v4 = vsel %vm1087_vm7, %v708_v58, %v1103_v63  ;;  %v734_v5 = vmax.f32 %v732_v52, %v733_v61  ;;  %v400_v40 = vadd.f32 %v2240_v39, %v399_v16 }
  0xd3   : > { %v1105_v6 = vsel %vm1089_vm8, %v715_v59, %v1104_v4  ;;  %v728_v7 = vrot.slane %v727_v0, 1  ;;  %v741_v8 = vmax.f32 %v739_v56, %v740_v1  ;;  %v747_v9 = vrot.slane %v746_v2, 2 }
  0xd4   : > { %v1106_v10 = vsel %vm1091_vm9, %v722_v3, %v1105_v6  ;;  %v735_v11 = vrot.slane %v734_v5, 1  ;;  %v433_v12 = vmax.f32 %v400_v40, 0.0  ;;  %v403_v13 = vadd.f32 %v2240_v39, %v402_v53 }
  0xd5   : > { %1152 = vst [vmem:[#allocation2 + $0x19] sm:$0xff] %v1106_v10  ;;  %v729_v14 = vmax.f32 %v727_v0, %v728_v7  ;;  %v742_v15 = vrot.slane %v741_v8, 1  ;;  %v748_v17 = vmax.f32 %v746_v2, %v747_v9  ;;  %1228 = vmatmul.f32.gmra.mxu1 %v1106_v10 }
  0xd6   : > { %v736_v18 = vmax.f32 %v734_v5, %v735_v11  ;;  %v479_v19 = vrot.slane %v433_v12, 2  ;;  %v480_v20 = vrot.slane %v433_v12, 4  ;;  %v481_v16 = vrot.slane %v433_v12, 6  ;;  %v2408_v21 = vpop.f32.mrf.mxu0 }
  0xd7   : > { %v743_v22 = vmax.f32 %v741_v8, %v742_v15  ;;  %v749_v23 = vrot.slane %v748_v17, 1  ;;  %v751_v24 = vsel %vm554_vm2, %v433_v12, -inf  ;;  %v434_v25 = vmax.f32 %v403_v13, 0.0 }
  0xd8   : > { %v1107_v26 = vsel %vm1079_vm3, %v736_v18, %v729_v14  ;;  %v752_v27 = vrot.slane %v751_v24, 4  ;;  %v758_v28 = vsel %vm554_vm2, %v479_v19, -inf  ;;  %v765_v29 = vsel %vm554_vm2, %v480_v20, -inf }
  0xd9   : > { %v750_v30 = vmax.f32 %v748_v17, %v749_v23  ;;  %v1108_v31 = vsel %vm1081_vm4, %v743_v22, %v1107_v26  ;;  %v759_v32 = vrot.slane %v758_v28, 4  ;;  %v766_v33 = vrot.slane %v765_v29, 4 }
  0xda   : > { %v753_v34 = vmax.f32 %v751_v24, %v752_v27  ;;  %v772_v35 = vsel %vm554_vm2, %v481_v16, -inf  ;;  %v482_v36 = vrot.slane %v434_v25, 2  ;;  %v483_v37 = vrot.slane %v434_v25, 4 }
  0xdb   : > { %v1109_v38 = vsel %vm1083_vm5, %v750_v30, %v1108_v31  ;;  %v760_v41 = vmax.f32 %v758_v28, %v759_v32  ;;  %v767_v42 = vmax.f32 %v765_v29, %v766_v33  ;;  %v773_v43 = vrot.slane %v772_v35, 4 }
  0xdc   : > { %v754_v44 = vrot.slane %v753_v34, 2  ;;  %v484_v45 = vrot.slane %v434_v25, 6  ;;  %v779_v46 = vsel %vm554_vm2, %v434_v25, -inf  ;;  %v786_v47 = vsel %vm554_vm2, %v482_v36, -inf  ;;  %v1160_v48 = vld [vmem:[#allocation2 + $0x18] sm:$0xff] }
  0xdd   : > { %v761_v49 = vrot.slane %v760_v41, 2  ;;  %v768_v50 = vrot.slane %v767_v42, 2  ;;  %v774_v51 = vmax.f32 %v772_v35, %v773_v43  ;;  %v780_v52 = vrot.slane %v779_v46, 4  ;;  %1269 = vmatmul.f32.gmra.mxu2 %v1160_v48 }
  0xde   : > { %v755_v53 = vmax.f32 %v753_v34, %v754_v44  ;;  %v787_v54 = vrot.slane %v786_v47, 4  ;;  %v793_v55 = vsel %vm554_vm2, %v483_v37, -inf  ;;  %v800_v56 = vsel %vm554_vm2, %v484_v45, -inf  ;;  %v408_v57 = vpop.f32.mrf.mxu0 }
  0xdf   : > { %v762_v58 = vmax.f32 %v760_v41, %v761_v49  ;;  %v769_v59 = vmax.f32 %v767_v42, %v768_v50  ;;  %v775_v60 = vrot.slane %v774_v51, 2  ;;  %v781_v61 = vmax.f32 %v779_v46, %v780_v52 }
  0xe0   : > { %v756_v62 = vrot.slane %v755_v53, 1  ;;  %v788_v63 = vmax.f32 %v786_v47, %v787_v54  ;;  %v794_v0 = vrot.slane %v793_v55, 4  ;;  %v801_v1 = vrot.slane %v800_v56, 4 }
  0xe1   : > { %v763_v2 = vrot.slane %v762_v58, 1  ;;  %v770_v3 = vrot.slane %v769_v59, 1  ;;  %v776_v4 = vmax.f32 %v774_v51, %v775_v60  ;;  %v782_v5 = vrot.slane %v781_v61, 2 }
  0xe2   : > { %v757_v40 = vmax.f32 %v755_v53, %v756_v62  ;;  %v789_v6 = vrot.slane %v788_v63, 2  ;;  %v795_v7 = vmax.f32 %v793_v55, %v794_v0  ;;  %v802_v8 = vmax.f32 %v800_v56, %v801_v1 }
  0xe3   : > { %v764_v9 = vmax.f32 %v762_v58, %v763_v2  ;;  %v771_v10 = vmax.f32 %v769_v59, %v770_v3  ;;  %v777_v11 = vrot.slane %v776_v4, 1  ;;  %v783_v12 = vmax.f32 %v781_v61, %v782_v5 }
  0xe4   : > { %v1110_v13 = vsel %vm1085_vm6, %v757_v40, %v1109_v38  ;;  %v790_v14 = vmax.f32 %v788_v63, %v789_v6  ;;  %v796_v15 = vrot.slane %v795_v7, 2  ;;  %v803_v17 = vrot.slane %v802_v8, 2 }
  0xe5   : > { %v778_v18 = vmax.f32 %v776_v4, %v777_v11  ;;  %v1111_v19 = vsel %vm1087_vm7, %v764_v9, %v1110_v13  ;;  %v784_v20 = vrot.slane %v783_v12, 1  ;;  %v406_v16 = vadd.f32 %v2240_v39, %v2408_v21 }
  0xe6   : > { %v1112_v22 = vsel %vm1089_vm8, %v771_v10, %v1111_v19  ;;  %v791_v23 = vrot.slane %v790_v14, 1  ;;  %v797_v24 = vmax.f32 %v795_v7, %v796_v15  ;;  %v804_v25 = vmax.f32 %v802_v8, %v803_v17  ;;  %v411_v26 = vpop.f32.mrf.mxu0 }
  0xe7   : > { %v1113_v27 = vsel %vm1091_vm9, %v778_v18, %v1112_v22  ;;  %v785_v28 = vmax.f32 %v783_v12, %v784_v20  ;;  %v435_v29 = vmax.f32 %v406_v16, 0.0  ;;  %v409_v30 = vadd.f32 %v2240_v39, %v408_v57 }
  0xe8   : > { %1153 = vst [vmem:[#allocation2 + $0x21] sm:$0xff] %v1113_v27  ;;  %v792_v31 = vmax.f32 %v790_v14, %v791_v23  ;;  %v798_v32 = vrot.slane %v797_v24, 1  ;;  %v805_v33 = vrot.slane %v804_v25, 1  ;;  %1231 = vmatmul.f32.gmra.mxu1 %v1113_v27  ;;  %v2429_v34 = vadd.f32 %v2240_v39, %v411_v26 }
  0xe9   : > { %v485_v21 = vrot.slane %v435_v29, 2  ;;  %v486_v35 = vrot.slane %v435_v29, 4  ;;  %v487_v36 = vrot.slane %v435_v29, 6  ;;  %v807_v37 = vsel %vm554_vm2, %v435_v29, -inf }
  0xea   : > { %v799_v38 = vmax.f32 %v797_v24, %v798_v32  ;;  %v806_v41 = vmax.f32 %v804_v25, %v805_v33  ;;  %v1114_v42 = vsel %vm1079_vm3, %v792_v31, %v785_v28  ;;  %v808_v43 = vrot.slane %v807_v37, 4 }
  0xeb   : > { %v814_v44 = vsel %vm554_vm2, %v485_v21, -inf  ;;  %v821_v45 = vsel %vm554_vm2, %v486_v35, -inf  ;;  %v828_v46 = vsel %vm554_vm2, %v487_v36, -inf  ;;  %v436_v47 = vmax.f32 %v409_v30, 0.0 }
  0xec   : > { %v1115_v39 = vsel %vm1081_vm4, %v799_v38, %v1114_v42  ;;  %v809_v48 = vmax.f32 %v807_v37, %v808_v43  ;;  %v815_v49 = vrot.slane %v814_v44, 4  ;;  %v822_v50 = vrot.slane %v821_v45, 4  ;;  %v2448_v38 = vld [vmem:[%s2742_s2] ss:$0 sm:$0xff] }
  0xed   : > { %v1116_v51 = vsel %vm1083_vm5, %v806_v41, %v1115_v39  ;;  %v829_v52 = vrot.slane %v828_v46, 4  ;;  %v488_v53 = vrot.slane %v436_v47, 2  ;;  %v489_v54 = vrot.slane %v436_v47, 4 }
  0xee   : > { %v810_v55 = vrot.slane %v809_v48, 2  ;;  %v816_v56 = vmax.f32 %v814_v44, %v815_v49  ;;  %v823_v57 = vmax.f32 %v821_v45, %v822_v50  ;;  %v490_v58 = vrot.slane %v436_v47, 6  ;;  %v414_v16 = vpop.f32.mrf.mxu0 }
  0xef   : > { %v830_v59 = vmax.f32 %v828_v46, %v829_v52  ;;  %v835_v60 = vsel %vm554_vm2, %v436_v47, -inf  ;;  %v842_v61 = vsel %vm554_vm2, %v488_v53, -inf  ;;  %v849_v62 = vsel %vm554_vm2, %v489_v54, -inf  ;;  %v1161_v63 = vld [vmem:[#allocation2 + $0x20] sm:$0xff] }
  0xf0   : > { %v1290_v0 = vld [vmem:[#allocation2 + $0x1a] sm:$0xff]  ;;  %v811_v1 = vmax.f32 %v809_v48, %v810_v55  ;;  %v817_v2 = vrot.slane %v816_v56, 2  ;;  %v824_v3 = vrot.slane %v823_v57, 2  ;;  %v836_v4 = vrot.slane %v835_v60, 4  ;;  %1272 = vmatmul.f32.gmra.mxu2 %v1161_v63  ;;  %v1291_v21 = vld [vmem:[#allocation2 + $0x22] sm:$0xff] }
  0xf1   : > { %1334 = vmatmul.f32.gmra.mxu3 %v1290_v0  ;;  %v831_v5 = vrot.slane %v830_v59, 2  ;;  %v843_v40 = vrot.slane %v842_v61, 4  ;;  %v850_v6 = vrot.slane %v849_v62, 4  ;;  %v856_v7 = vsel %vm554_vm2, %v490_v58, -inf }
  0xf2   : > { %v812_v8 = vrot.slane %v811_v1, 1  ;;  %v818_v9 = vmax.f32 %v816_v56, %v817_v2  ;;  %v825_v10 = vmax.f32 %v823_v57, %v824_v3  ;;  %v837_v11 = vmax.f32 %v835_v60, %v836_v4 }
  0xf3   : > { %v832_v12 = vmax.f32 %v830_v59, %v831_v5  ;;  %v844_v13 = vmax.f32 %v842_v61, %v843_v40  ;;  %v851_v14 = vmax.f32 %v849_v62, %v850_v6  ;;  %v857_v15 = vrot.slane %v856_v7, 4 }
  0xf4   : > { %v813_v17 = vmax.f32 %v811_v1, %v812_v8  ;;  %v819_v18 = vrot.slane %v818_v9, 1  ;;  %v826_v19 = vrot.slane %v825_v10, 1  ;;  %v838_v20 = vrot.slane %v837_v11, 2 }
  0xf5   : > { %v833_v22 = vrot.slane %v832_v12, 1  ;;  %v845_v23 = vrot.slane %v844_v13, 2  ;;  %v852_v24 = vrot.slane %v851_v14, 2  ;;  %v858_v25 = vmax.f32 %v856_v7, %v857_v15 }
  0xf6   : > { %v820_v26 = vmax.f32 %v818_v9, %v819_v18  ;;  %v827_v27 = vmax.f32 %v825_v10, %v826_v19  ;;  %v1117_v28 = vsel %vm1085_vm6, %v813_v17, %v1116_v51  ;;  %v839_v29 = vmax.f32 %v837_v11, %v838_v20  ;;  %v417_v0 = vpop.f32.mrf.mxu0 }
  0xf7   : > { %v834_v30 = vmax.f32 %v832_v12, %v833_v22  ;;  %v846_v31 = vmax.f32 %v844_v13, %v845_v23  ;;  %v853_v32 = vmax.f32 %v851_v14, %v852_v24  ;;  %v859_v33 = vrot.slane %v858_v25, 2 }
  0xf8   : > { %v1118_v35 = vsel %vm1087_vm7, %v820_v26, %v1117_v28  ;;  %v840_v36 = vrot.slane %v839_v29, 1  ;;  %v437_v37 = vmax.f32 %v2429_v34, 0.0  ;;  %v415_v41 = vadd.f32 %v2448_v38, %v414_v16 }
  0xf9   : > { %1337 = vmatmul.f32.gmra.mxu3 %v1291_v21  ;;  %v1119_v42 = vsel %vm1089_vm8, %v827_v27, %v1118_v35  ;;  %v847_v43 = vrot.slane %v846_v31, 1  ;;  %v854_v44 = vrot.slane %v853_v32, 1  ;;  %v860_v45 = vmax.f32 %v858_v25, %v859_v33 }
  0xfa   : > { %v1120_v46 = vsel %vm1091_vm9, %v834_v30, %v1119_v42  ;;  %v841_v47 = vmax.f32 %v839_v29, %v840_v36  ;;  %v491_v39 = vrot.slane %v437_v37, 2  ;;  %v492_v48 = vrot.slane %v437_v37, 4 }
  0xfb   : > { %1154 = vst [vmem:[#allocation2 + $0x31] sm:$0xff] %v1120_v46  ;;  %v848_v34 = vmax.f32 %v846_v31, %v847_v43  ;;  %v855_v49 = vmax.f32 %v853_v32, %v854_v44  ;;  %v861_v50 = vrot.slane %v860_v45, 1  ;;  %v493_v51 = vrot.slane %v437_v37, 6  ;;  %1234 = vmatmul.f32.gmra.mxu1 %v1120_v46 }
  0xfc   : > { %v863_v52 = vsel %vm554_vm2, %v437_v37, -inf  ;;  %v870_v53 = vsel %vm554_vm2, %v491_v39, -inf  ;;  %v877_v54 = vsel %vm554_vm2, %v492_v48, -inf  ;;  %v438_v55 = vmax.f32 %v415_v41, 0.0 }
  0xfd   : > { %v862_v56 = vmax.f32 %v860_v45, %v861_v50  ;;  %v1121_v57 = vsel %vm1079_vm3, %v848_v34, %v841_v47  ;;  %v864_v58 = vrot.slane %v863_v52, 4  ;;  %v871_v59 = vrot.slane %v870_v53, 4 }
  0xfe   : > { %v1122_v60 = vsel %vm1081_vm4, %v855_v49, %v1121_v57  ;;  %v878_v61 = vrot.slane %v877_v54, 4  ;;  %v884_v62 = vsel %vm554_vm2, %v493_v51, -inf  ;;  %v494_v63 = vrot.slane %v438_v55, 2  ;;  %v420_v45 = vpop.f32.mrf.mxu0 }
  0xff   : > { %v1123_v1 = vsel %vm1083_vm5, %v862_v56, %v1122_v60  ;;  %v865_v2 = vmax.f32 %v863_v52, %v864_v58  ;;  %v872_v3 = vmax.f32 %v870_v53, %v871_v59  ;;  %v885_v4 = vrot.slane %v884_v62, 4 }
 0x100   : > { %v879_v5 = vmax.f32 %v877_v54, %v878_v61  ;;  %v495_v40 = vrot.slane %v438_v55, 4  ;;  %v496_v6 = vrot.slane %v438_v55, 6  ;;  %v891_v7 = vsel %vm554_vm2, %v438_v55, -inf }
 0x101   : > { %v866_v8 = vrot.slane %v865_v2, 2  ;;  %v873_v9 = vrot.slane %v872_v3, 2  ;;  %v886_v10 = vmax.f32 %v884_v62, %v885_v4  ;;  %v892_v11 = vrot.slane %v891_v7, 4 }
 0x102   : > { %v880_v12 = vrot.slane %v879_v5, 2  ;;  %v898_v13 = vsel %vm554_vm2, %v494_v63, -inf  ;;  %v905_v14 = vsel %vm554_vm2, %v495_v40, -inf  ;;  %v912_v15 = vsel %vm554_vm2, %v496_v6, -inf  ;;  %v1162_v17 = vld [vmem:[#allocation2 + $0x30] sm:$0xff] }
 0x103   : > { %v867_v18 = vmax.f32 %v865_v2, %v866_v8  ;;  %v874_v19 = vmax.f32 %v872_v3, %v873_v9  ;;  %v887_v20 = vrot.slane %v886_v10, 2  ;;  %v893_v16 = vmax.f32 %v891_v7, %v892_v11  ;;  %1275 = vmatmul.f32.gmra.mxu2 %v1162_v17 }
 0x104   : > { %v881_v22 = vmax.f32 %v879_v5, %v880_v12  ;;  %v899_v23 = vrot.slane %v898_v13, 4  ;;  %v906_v24 = vrot.slane %v905_v14, 4  ;;  %v913_v25 = vrot.slane %v912_v15, 4 }
 0x105   : > { %v868_v26 = vrot.slane %v867_v18, 1  ;;  %v875_v27 = vrot.slane %v874_v19, 1  ;;  %v888_v28 = vmax.f32 %v886_v10, %v887_v20  ;;  %v894_v29 = vrot.slane %v893_v16, 2 }
 0x106   : > { %v882_v30 = vrot.slane %v881_v22, 1  ;;  %v900_v31 = vmax.f32 %v898_v13, %v899_v23  ;;  %v907_v32 = vmax.f32 %v905_v14, %v906_v24  ;;  %v914_v33 = vmax.f32 %v912_v15, %v913_v25 }
 0x107   : > { %v869_v21 = vmax.f32 %v867_v18, %v868_v26  ;;  %v876_v35 = vmax.f32 %v874_v19, %v875_v27  ;;  %v889_v36 = vrot.slane %v888_v28, 1  ;;  %v895_v37 = vmax.f32 %v893_v16, %v894_v29 }
 0x108   : > { %v883_v41 = vmax.f32 %v881_v22, %v882_v30  ;;  %v901_v42 = vrot.slane %v900_v31, 2  ;;  %v908_v43 = vrot.slane %v907_v32, 2  ;;  %v915_v44 = vrot.slane %v914_v33, 2 }
 0x109   : > { %v890_v46 = vmax.f32 %v888_v28, %v889_v36  ;;  %v1124_v47 = vsel %vm1085_vm6, %v869_v21, %v1123_v1  ;;  %v896_v39 = vrot.slane %v895_v37, 1  ;;  %v418_v48 = vadd.f32 %v2448_v38, %v417_v0 }
 0x10a   : > { %v1125_v34 = vsel %vm1087_vm7, %v876_v35, %v1124_v47  ;;  %v902_v49 = vmax.f32 %v900_v31, %v901_v42  ;;  %v909_v50 = vmax.f32 %v907_v32, %v908_v43  ;;  %v916_v51 = vmax.f32 %v914_v33, %v915_v44 }
 0x10b   : > { %v1126_v52 = vsel %vm1089_vm8, %v883_v41, %v1125_v34  ;;  %v897_v53 = vmax.f32 %v895_v37, %v896_v39  ;;  %v439_v54 = vmax.f32 %v418_v48, 0.0  ;;  %v421_v55 = vadd.f32 %v2448_v38, %v420_v45 }
 0x10c   : > { %v1127_v56 = vsel %vm1091_vm9, %v890_v46, %v1126_v52  ;;  %v903_v57 = vrot.slane %v902_v49, 1  ;;  %v910_v58 = vrot.slane %v909_v50, 1  ;;  %v917_v59 = vrot.slane %v916_v51, 1 }
 0x10d   : > { %1155 = vst [vmem:[#allocation2 + $0x39] sm:$0xff] %v1127_v56  ;;  %v497_v60 = vrot.slane %v439_v54, 2  ;;  %v498_v61 = vrot.slane %v439_v54, 4  ;;  %v499_v62 = vrot.slane %v439_v54, 6  ;;  %v919_v63 = vsel %vm554_vm2, %v439_v54, -inf  ;;  %1237 = vmatmul.f32.gmra.mxu1 %v1127_v56 }
 0x10e   : > { %v904_v0 = vmax.f32 %v902_v49, %v903_v57  ;;  %v911_v1 = vmax.f32 %v909_v50, %v910_v58  ;;  %v918_v2 = vmax.f32 %v916_v51, %v917_v59  ;;  %v920_v3 = vrot.slane %v919_v63, 4  ;;  %v423_v51 = vpop.f32.mrf.mxu0 }
 0x10f   : > { %v926_v4 = vsel %vm554_vm2, %v497_v60, -inf  ;;  %v933_v5 = vsel %vm554_vm2, %v498_v61, -inf  ;;  %v940_v40 = vsel %vm554_vm2, %v499_v62, -inf  ;;  %v440_v6 = vmax.f32 %v421_v55, 0.0 }
 0x110   : > { %v1128_v7 = vsel %vm1079_vm3, %v904_v0, %v897_v53  ;;  %v921_v8 = vmax.f32 %v919_v63, %v920_v3  ;;  %v927_v9 = vrot.slane %v926_v4, 4  ;;  %v934_v10 = vrot.slane %v933_v5, 4 }
 0x111   : > { %v1129_v11 = vsel %vm1081_vm4, %v911_v1, %v1128_v7  ;;  %v941_v12 = vrot.slane %v940_v40, 4  ;;  %v500_v13 = vrot.slane %v440_v6, 2  ;;  %v501_v14 = vrot.slane %v440_v6, 4 }
 0x112   : > { %v1130_v15 = vsel %vm1083_vm5, %v918_v2, %v1129_v11  ;;  %v922_v17 = vrot.slane %v921_v8, 2  ;;  %v928_v18 = vmax.f32 %v926_v4, %v927_v9  ;;  %v935_v19 = vmax.f32 %v933_v5, %v934_v10 }
 0x113   : > { %v942_v20 = vmax.f32 %v940_v40, %v941_v12  ;;  %v502_v16 = vrot.slane %v440_v6, 6  ;;  %v947_v22 = vsel %vm554_vm2, %v440_v6, -inf  ;;  %v954_v23 = vsel %vm554_vm2, %v500_v13, -inf }
 0x114   : > { %v923_v24 = vmax.f32 %v921_v8, %v922_v17  ;;  %v929_v25 = vrot.slane %v928_v18, 2  ;;  %v936_v26 = vrot.slane %v935_v19, 2  ;;  %v948_v27 = vrot.slane %v947_v22, 4  ;;  %v1163_v28 = vld [vmem:[#allocation2 + $0x38] sm:$0xff]  ;;  %v1447_v17 = vld [vmem:[%s2745_s5 + $0xf0] sm:$0xff] }
 0x115   : > { %v1292_v29 = vld [vmem:[#allocation2 + $0x32] sm:$0xff]  ;;  %v943_v30 = vrot.slane %v942_v20, 2  ;;  %v955_v31 = vrot.slane %v954_v23, 4  ;;  %v961_v32 = vsel %vm554_vm2, %v501_v14, -inf  ;;  %v968_v33 = vsel %vm554_vm2, %v502_v16, -inf  ;;  %1278 = vmatmul.f32.gmra.mxu2 %v1163_v28  ;;  %v1293_v61 = vld [vmem:[#allocation2 + $0x3a] sm:$0xff] }
 0x116   : > { %1340 = vmatmul.f32.gmra.mxu3 %v1292_v29  ;;  %v924_v21 = vrot.slane %v923_v24, 1  ;;  %v930_v35 = vmax.f32 %v928_v18, %v929_v25  ;;  %v937_v36 = vmax.f32 %v935_v19, %v936_v26  ;;  %v949_v37 = vmax.f32 %v947_v22, %v948_v27  ;;  %v1448_v14 = vld [vmem:[%s2745_s5 + $0xf8] sm:$0xff]  ;;  %v1423_v16 = vld [vmem:[%s2745_s5 + $0x70] sm:$0xff]  ;;  %v1422_v29 = vld [vmem:[%s2745_s5 + $0x68] sm:$0xff] }
 0x117   : > { %v944_v41 = vmax.f32 %v942_v20, %v943_v30  ;;  %v956_v42 = vmax.f32 %v954_v23, %v955_v31  ;;  %v962_v43 = vrot.slane %v961_v32, 4  ;;  %v969_v44 = vrot.slane %v968_v33, 4  ;;  %1449 = vmatpush.msrb.mxu1 %v1448_v14  ;;  %v1554_v30 = vld [vmem:[%s2745_s5 + $0x178] sm:$0xff]  ;;  %v1437_v14 = vld [vmem:[%s2745_s5 + $0xa0] sm:$0xff] }
 0x118   : > { %v925_v45 = vmax.f32 %v923_v24, %v924_v21  ;;  %v931_v46 = vrot.slane %v930_v35, 1  ;;  %v938_v47 = vrot.slane %v937_v36, 1  ;;  %v950_v39 = vrot.slane %v949_v37, 2  ;;  %v1446_v24 = vld [vmem:[%s2745_s5 + $0xe8] sm:$0xff]  ;;  %1555 = vmatpush.msrb.mxu3 %v1554_v30 }
 0x119   : > { %v945_v48 = vrot.slane %v944_v41, 1  ;;  %v957_v34 = vrot.slane %v956_v42, 2  ;;  %v963_v49 = vmax.f32 %v961_v32, %v962_v43  ;;  %v970_v50 = vmax.f32 %v968_v33, %v969_v44  ;;  %1450 = vmatpush.msrb.mxu1 %v1447_v17  ;;  %v1421_v43 = vld [vmem:[%s2745_s5 + $0x60] sm:$0xff]  ;;  %v1552_v44 = vld [vmem:[%s2745_s5 + $0x168] sm:$0xff] }
 0x11a   : > { %v932_v52 = vmax.f32 %v930_v35, %v931_v46  ;;  %v939_v53 = vmax.f32 %v937_v36, %v938_v47  ;;  %v1131_v54 = vsel %vm1085_vm6, %v925_v45, %v1130_v15  ;;  %v951_v55 = vmax.f32 %v949_v37, %v950_v39  ;;  %v1424_v15 = vld [vmem:[%s2745_s5 + $0x78] sm:$0xff]  ;;  %v1445_v35 = vld [vmem:[%s2745_s5 + $0xe0] sm:$0xff]  ;;  %v1553_v36 = vld [vmem:[%s2745_s5 + $0x170] sm:$0xff] }
 0x11b   : > { %v958_v56 = vmax.f32 %v956_v42, %v957_v34  ;;  %v964_v57 = vrot.slane %v963_v49, 2  ;;  %v946_v58 = vmax.f32 %v944_v41, %v945_v48  ;;  %v424_v60 = vadd.f32 %v2448_v38, %v423_v51  ;;  %1490 = vmatpush.msrb.mxu2 %v1424_v15  ;;  %1451 = vmatpush.msrb.mxu1 %v1446_v24  ;;  %v1444_v46 = vld [vmem:[%s2745_s5 + $0xd8] sm:$0xff]  ;;  %v1413_v15 = vld [vmem:[%s2745_s5 + $0x20] sm:$0xff]  ;;  %v1411_v24 = vld [vmem:[%s2745_s5 + $0x10] sm:$0xff] }
 0x11c   : > { %v1132_v59 = vsel %vm1087_vm7, %v932_v52, %v1131_v54  ;;  %v971_v0 = vrot.slane %v970_v50, 2  ;;  %v952_v4 = vrot.slane %v951_v55, 1  ;;  %1556 = vmatpush.msrb.mxu3 %v1553_v36  ;;  %v1540_v36 = vld [vmem:[%s2745_s5 + $0x108] sm:$0xff] }
 0x11d   : > { %v1133_v62 = vsel %vm1089_vm8, %v939_v53, %v1132_v59  ;;  %v965_v63 = vmax.f32 %v963_v49, %v964_v57  ;;  %v959_v2 = vrot.slane %v958_v56, 1  ;;  %v441_v3 = vmax.f32 %v424_v60, 0.0  ;;  %1491 = vmatpush.msrb.mxu2 %v1423_v16  ;;  %1452 = vmatpush.msrb.mxu1 %v1445_v35  ;;  %v1420_v49 = vld [vmem:[%s2745_s5 + $0x58] sm:$0xff]  ;;  %v1443_v53 = vld [vmem:[%s2745_s5 + $0xd0] sm:$0xff]  ;;  %v1442_v60 = vld [vmem:[%s2745_s5 + $0xc8] sm:$0xff] }
 0x11e   : > { %1343 = vmatmul.f32.gmra.mxu3 %v1293_v61  ;;  %v1134_v1 = vsel %vm1091_vm9, %v946_v58, %v1133_v62  ;;  %v972_v38 = vmax.f32 %v970_v50, %v971_v0  ;;  %v953_v22 = vmax.f32 %v951_v55, %v952_v4  ;;  %v1551_v50 = vld [vmem:[%s2745_s5 + $0x160] sm:$0xff]  ;;  %v1419_v57 = vld [vmem:[%s2745_s5 + $0x50] sm:$0xff]  ;;  %v1418_v0 = vld [vmem:[%s2745_s5 + $0x48] sm:$0xff] }
 0x11f   : > { %1156 = vst [vmem:[#allocation2 + $0x49] sm:$0xff] %v1134_v1  ;;  %1240 = vmatmul.f32.gmra.mxu1 %v1134_v1  ;;  %v503_v5 = vrot.slane %v441_v3, 2  ;;  %v504_v40 = vrot.slane %v441_v3, 4  ;;  %v505_v6 = vrot.slane %v441_v3, 6  ;;  %v975_v7 = vsel %vm554_vm2, %v441_v3, -inf  ;;  %1492 = vmatpush.msrb.mxu2 %v1422_v29  ;;  %v1441_v1 = vld [vmem:[%s2745_s5 + $0xc0] sm:$0xff] }
 0x120   : > { %v966_v8 = vrot.slane %v965_v63, 1  ;;  %v976_v9 = vrot.slane %v975_v7, 4  ;;  %v960_v10 = vmax.f32 %v958_v56, %v959_v2  ;;  %v973_v31 = vrot.slane %v972_v38, 1  ;;  %1557 = vmatpush.msrb.mxu3 %v1552_v44  ;;  %1453 = vmatpush.msrb.mxu1 %v1444_v46  ;;  %v1417_v4 = vld [vmem:[%s2745_s5 + $0x40] sm:$0xff]  ;;  %v1412_v16 = vld [vmem:[%s2745_s5 + $0x18] sm:$0xff] }
 0x121   : > { %v982_v11 = vsel %vm554_vm2, %v503_v5, -inf  ;;  %v989_v12 = vsel %vm554_vm2, %v504_v40, -inf  ;;  %v996_v13 = vsel %vm554_vm2, %v505_v6, -inf  ;;  %1493 = vmatpush.msrb.mxu2 %v1421_v43  ;;  %v1440_v6 = vld [vmem:[%s2745_s5 + $0xb8] sm:$0xff]  ;;  %v1433_v29 = vld [vmem:[%s2745_s5 + $0x80] sm:$0xff] }
 0x122   : > { %v977_v18 = vmax.f32 %v975_v7, %v976_v9  ;;  %v983_v19 = vrot.slane %v982_v11, 4  ;;  %v990_v20 = vrot.slane %v989_v12, 4  ;;  %v997_v23 = vrot.slane %v996_v13, 4  ;;  %1558 = vmatpush.msrb.mxu3 %v1551_v50  ;;  %1454 = vmatpush.msrb.mxu1 %v1443_v53  ;;  %v1416_v7 = vld [vmem:[%s2745_s5 + $0x38] sm:$0xff]  ;;  %v1415_v9 = vld [vmem:[%s2745_s5 + $0x30] sm:$0xff] }
 0x123   : > { %v967_v25 = vmax.f32 %v965_v63, %v966_v8  ;;  %v1135_v32 = vsel %vm1079_vm3, %v960_v10, %v953_v22  ;;  %v974_v51 = vmax.f32 %v972_v38, %v973_v31  ;;  %1494 = vmatpush.msrb.mxu2 %v1420_v49  ;;  %v1550_v8 = vld [vmem:[%s2745_s5 + $0x158] sm:$0xff]  ;;  %v1439_v38 = vld [vmem:[%s2745_s5 + $0xb0] sm:$0xff]  ;;  %v1409_v31 = vld [vmem:[%s2745_s5] sm:$0xff] }
 0x124   : > { %v978_v26 = vrot.slane %v977_v18, 2  ;;  %v984_v27 = vmax.f32 %v982_v11, %v983_v19  ;;  %v991_v28 = vmax.f32 %v989_v12, %v990_v20  ;;  %v998_v33 = vmax.f32 %v996_v13, %v997_v23  ;;  %1455 = vmatpush.msrb.mxu1 %v1442_v60  ;;  %v1549_v10 = vld [vmem:[%s2745_s5 + $0x150] sm:$0xff]  ;;  %1559 = vmatpush.msrb.mxu3 %v1550_v8  ;;  %v1438_v11 = vld [vmem:[%s2745_s5 + $0xa8] sm:$0xff]  ;;  %v1547_v19 = vld [vmem:[%s2745_s5 + $0x140] sm:$0xff] }
 0x125   : > { %v1136_v47 = vsel %vm1081_vm4, %v967_v25, %v1135_v32  ;;  %1495 = vmatpush.msrb.mxu2 %v1419_v57  ;;  %v1414_v12 = vld [vmem:[%s2745_s5 + $0x28] sm:$0xff]  ;;  %v1436_v20 = vld [vmem:[%s2745_s5 + $0x98] sm:$0xff]  ;;  %v1435_v23 = vld [vmem:[%s2745_s5 + $0x90] sm:$0xff] }
 0x126   : > { %v1164_v21 = vld [vmem:[#allocation2 + $0x48] sm:$0xff]  ;;  %v979_v37 = vmax.f32 %v977_v18, %v978_v26  ;;  %v985_v41 = vrot.slane %v984_v27, 2  ;;  %v992_v42 = vrot.slane %v991_v28, 2  ;;  %v999_v45 = vrot.slane %v998_v33, 2  ;;  %1456 = vmatpush.msrb.mxu1 %v1441_v1  ;;  %1560 = vmatpush.msrb.mxu3 %v1549_v10  ;;  %v1546_v22 = vld [vmem:[%s2745_s5 + $0x138] sm:$0xff]  ;;  %v1545_v25 = vld [vmem:[%s2745_s5 + $0x130] sm:$0xff] }
 0x127   : > { %1281 = vmatmul.f32.gmra.mxu2 %v1164_v21  ;;  %v1137_v58 = vsel %vm1083_vm5, %v974_v51, %v1136_v47  ;;  %v1548_v13 = vld [vmem:[%s2745_s5 + $0x148] sm:$0xff]  ;;  %v1543_v32 = vld [vmem:[%s2745_s5 + $0x120] sm:$0xff]  ;;  %v1541_v21 = vld [vmem:[%s2745_s5 + $0x110] sm:$0xff] }
 0x128   : > { %v980_v39 = vrot.slane %v979_v37, 1  ;;  %v986_v48 = vmax.f32 %v984_v27, %v985_v41  ;;  %v993_v34 = vmax.f32 %v991_v28, %v992_v42  ;;  %v1000_v52 = vmax.f32 %v998_v33, %v999_v45  ;;  %1496 = vmatpush.msrb.mxu2 %v1418_v0  ;;  %1457 = vmatpush.msrb.mxu1 %v1440_v6  ;;  %v1434_v26 = vld [vmem:[%s2745_s5 + $0x88] sm:$0xff]  ;;  %v1542_v33 = vld [vmem:[%s2745_s5 + $0x118] sm:$0xff]  ;;  %v1539_v41 = vld [vmem:[%s2745_s5 + $0x100] sm:$0xff] }
 0x129   : > { %1561 = vmatpush.msrb.mxu3 %v1548_v13  ;;  %v1410_v27 = vld [vmem:[%s2745_s5 + $0x8] sm:$0xff]  ;;  %v2644_v43 = vld [vmem:[%s2744_s4] ss:$0 sm:$0xff] }
 0x12a   : > { %v981_v54 = vmax.f32 %v979_v37, %v980_v39  ;;  %v987_v55 = vrot.slane %v986_v48, 1  ;;  %v994_v56 = vrot.slane %v993_v34, 1  ;;  %v1001_v59 = vrot.slane %v1000_v52, 1  ;;  %1497 = vmatpush.msrb.mxu2 %v1417_v4  ;;  %1458 = vmatpush.msrb.mxu1 %v1439_v38  ;;  %v1544_v28 = vld [vmem:[%s2745_s5 + $0x128] sm:$0xff]  ;;  %v1223_v37 = vpop.f32.mrf.mxu1 }
 0x12b   : > { %1562 = vmatpush.msrb.mxu3 %v1547_v19 }
 0x12c   : > { %v988_v61 = vmax.f32 %v986_v48, %v987_v55  ;;  %v995_v62 = vmax.f32 %v993_v34, %v994_v56  ;;  %v1138_v63 = vsel %vm1085_vm6, %v981_v54, %v1137_v58  ;;  %v1002_v2 = vmax.f32 %v1000_v52, %v1001_v59  ;;  %1498 = vmatpush.msrb.mxu2 %v1416_v7 }
 0x12d   : > { %1459 = vmatpush.msrb.mxu1 %v1438_v11  ;;  %1563 = vmatpush.msrb.mxu3 %v1546_v22 }
 0x12e   : > { %v1139_v3 = vsel %vm1087_vm7, %v988_v61, %v1138_v63  ;;  %1499 = vmatpush.msrb.mxu2 %v1415_v9 }
 0x12f   : > { %v1140_v5 = vsel %vm1089_vm8, %v995_v62, %v1139_v3  ;;  %1460 = vmatpush.msrb.mxu1 %v1437_v14  ;;  %1564 = vmatpush.msrb.mxu3 %v1545_v25 }
 0x130   : > { %v1141_v40 = vsel %vm1091_vm9, %v1002_v2, %v1140_v5  ;;  %1500 = vmatpush.msrb.mxu2 %v1414_v12 }
 0x131   : > { %1157 = vst [vmem:[#allocation2 + $0x51] sm:$0xff] %v1141_v40  ;;  %1243 = vmatmul.f32.gmra.mxu1 %v1141_v40  ;;  %1565 = vmatpush.msrb.mxu3 %v1544_v28 }
 0x132   : > { %1501 = vmatpush.msrb.mxu2 %v1413_v15  ;;  %1461 = vmatpush.msrb.mxu1 %v1436_v20 }
 0x133   : > { %1566 = vmatpush.msrb.mxu3 %v1543_v32 }
 0x134   : > { %1502 = vmatpush.msrb.mxu2 %v1412_v16  ;;  %1462 = vmatpush.msrb.mxu1 %v1435_v23 }
 0x135   : > { %1567 = vmatpush.msrb.mxu3 %v1542_v33 }
 0x136   : > { %1503 = vmatpush.msrb.mxu2 %v1411_v24  ;;  %1463 = vmatpush.msrb.mxu1 %v1434_v26 }
 0x137   : > { %1568 = vmatpush.msrb.mxu3 %v1541_v21 }
 0x138   : > { %v1165_v17 = vld [vmem:[#allocation2 + $0x50] sm:$0xff]  ;;  %1504 = vmatpush.msrb.mxu2 %v1410_v27  ;;  %1464 = vmatpush.msrb.mxu1 %v1433_v29  ;;  %v1264_v35 = vpop.f32.mrf.mxu2 }
 0x139   : > { %v1294_v18 = vld [vmem:[#allocation2 + $0x4a] sm:$0xff]  ;;  %1284 = vmatmul.f32.gmra.mxu2 %v1165_v17  ;;  %v1295_v30 = vld [vmem:[#allocation2 + $0x52] sm:$0xff]  ;;  %v1265_v42 = vadd.f32 %v1264_v35, %v1223_v37  ;;  %1569 = vmatpush.msrb.mxu3 %v1540_v36 }
 0x13a   : > { %1346 = vmatmul.f32.gmra.mxu3 %v1294_v18  ;;  %1505 = vmatpush.msrb.mxu2 %v1409_v31 }
 0x13b   : > { %1570 = vmatpush.msrb.mxu3 %v1539_v41 }
 0x13e   : > { %v1226_v48 = vpop.f32.mrf.mxu1 }
 0x142   : > { %1349 = vmatmul.f32.gmra.mxu3 %v1295_v30 }
 0x14c   : > { %v1267_v47 = vpop.f32.mrf.mxu2 }
 0x14d   : > { %v1329_v44 = vpop.f32.mrf.mxu3  ;;  %v1268_v34 = vadd.f32 %v1267_v47, %v1226_v48 }
 0x14e   : > { %v1353_v45 = vadd.f32 %v1329_v44, %v1265_v42 }
 0x150   : > { %v1365_v46 = vadd.f32 %v2644_v43, %v1353_v45 }
 0x152   : > { %v1373_v39 = vmax.f32 %v1365_v46, 0.0  ;;  %v1229_v58 = vpop.f32.mrf.mxu1 }
 0x154   : > { %1393 = vst [vmem:[#allocation3 + $0x1] sm:$0xff] %v1373_v39  ;;  %1465 = vmatmul.f32.vlgmr.msrb.gmra.mxu1 %v1373_v39 }
 0x155   : > { %v1332_v49 = vpop.f32.mrf.mxu3 }
 0x156   : > { %v1354_v50 = vadd.f32 %v1332_v49, %v1268_v34 }
 0x158   : > { %v1366_v51 = vadd.f32 %v2644_v43, %v1354_v50 }
 0x15a   : > { %v1374_v52 = vmax.f32 %v1366_v51, 0.0  ;;  %v2657_v51 = vld [vmem:[%s2746_s6] ss:$0 sm:$0xff] }
 0x15b   : > { %v1401_v53 = vld [vmem:[#allocation3] sm:$0xff] }
 0x15c   : > { %1394 = vst [vmem:[#allocation3 + $0x9] sm:$0xff] %v1374_v52  ;;  %1506 = vmatmul.f32.vlgmr.msrb.gmra.mxu2 %v1401_v53  ;;  %1468 = vmatmul.f32.gmra.mxu1 %v1374_v52 }
 0x160   : > { %v1270_v57 = vpop.f32.mrf.mxu2 }
 0x161   : > { %v1271_v59 = vadd.f32 %v1270_v57, %v1229_v58 }
 0x163   : > { %v1402_v54 = vld [vmem:[#allocation3 + $0x8] sm:$0xff] }
 0x164   : > { %v1531_v55 = vld [vmem:[#allocation3 + $0x2] sm:$0xff]  ;;  %1509 = vmatmul.f32.gmra.mxu2 %v1402_v54  ;;  %v1532_v56 = vld [vmem:[#allocation3 + $0xa] sm:$0xff] }
 0x165   : > { %1571 = vmatmul.f32.vlgmr.msrb.gmra.mxu3 %v1531_v55  ;;  %v1232_v1 = vpop.f32.mrf.mxu1 }
 0x16d   : > { %1574 = vmatmul.f32.gmra.mxu3 %v1532_v56 }
 0x173   : > { %v1273_v63 = vpop.f32.mrf.mxu2 }
 0x174   : > { %v1335_v60 = vpop.f32.mrf.mxu3  ;;  %v1274_v2 = vadd.f32 %v1273_v63, %v1232_v1 }
 0x175   : > { %v1355_v61 = vadd.f32 %v1335_v60, %v1271_v59 }
 0x177   : > { %v1367_v62 = vadd.f32 %v2644_v43, %v1355_v61 }
 0x178   : > { %v1235_v10 = vpop.f32.mrf.mxu1 }
 0x179   : > { %v1375_v0 = vmax.f32 %v1367_v62, 0.0 }
 0x17b   : > { %1395 = vst [vmem:[#allocation3 + $0x19] sm:$0xff] %v1375_v0  ;;  %1471 = vmatmul.f32.gmra.mxu1 %v1375_v0 }
 0x17c   : > { %v1338_v3 = vpop.f32.mrf.mxu3 }
 0x17d   : > { %v1356_v4 = vadd.f32 %v1338_v3, %v1274_v2 }
 0x17f   : > { %v1368_v5 = vadd.f32 %v2644_v43, %v1356_v4 }
 0x181   : > { %v1376_v40 = vmax.f32 %v1368_v5, 0.0 }
 0x182   : > { %v1403_v6 = vld [vmem:[#allocation3 + $0x18] sm:$0xff] }
 0x183   : > { %1396 = vst [vmem:[#allocation3 + $0x21] sm:$0xff] %v1376_v40  ;;  %1512 = vmatmul.f32.gmra.mxu2 %v1403_v6  ;;  %1474 = vmatmul.f32.gmra.mxu1 %v1376_v40 }
 0x186   : > { %v1276_v9 = vpop.f32.mrf.mxu2 }
 0x187   : > { %v1277_v11 = vadd.f32 %v1276_v9, %v1235_v10 }
 0x18a   : > { %v1404_v7 = vld [vmem:[#allocation3 + $0x20] sm:$0xff]  ;;  %v1238_v18 = vpop.f32.mrf.mxu1 }
 0x18b   : > { %v1533_v8 = vld [vmem:[#allocation3 + $0x1a] sm:$0xff]  ;;  %1515 = vmatmul.f32.gmra.mxu2 %v1404_v7  ;;  %v1534_v38 = vld [vmem:[#allocation3 + $0x22] sm:$0xff] }
 0x18c   : > { %1577 = vmatmul.f32.gmra.mxu3 %v1533_v8 }
 0x194   : > { %1580 = vmatmul.f32.gmra.mxu3 %v1534_v38 }
 0x198   : > { %v1279_v15 = vpop.f32.mrf.mxu2 }
 0x199   : > { %v1341_v12 = vpop.f32.mrf.mxu3  ;;  %v1280_v19 = vadd.f32 %v1279_v15, %v1238_v18 }
 0x19a   : > { %v1357_v13 = vadd.f32 %v1341_v12, %v1277_v11 }
 0x19c   : > { %v1369_v14 = vadd.f32 %v2644_v43, %v1357_v13  ;;  %v1241_v29 = vpop.f32.mrf.mxu1 }
 0x19e   : > { %v1377_v17 = vmax.f32 %v1369_v14, 0.0 }
 0x1a0   : > { %1397 = vst [vmem:[#allocation3 + $0x31] sm:$0xff] %v1377_v17  ;;  %1477 = vmatmul.f32.gmra.mxu1 %v1377_v17 }
 0x1a1   : > { %v1344_v20 = vpop.f32.mrf.mxu3 }
 0x1a2   : > { %v1358_v16 = vadd.f32 %v1344_v20, %v1280_v19 }
 0x1a4   : > { %v1370_v22 = vadd.f32 %v2644_v43, %v1358_v16 }
 0x1a6   : > { %v1378_v23 = vmax.f32 %v1370_v22, 0.0 }
 0x1a7   : > { %v1405_v24 = vld [vmem:[#allocation3 + $0x30] sm:$0xff] }
 0x1a8   : > { %1398 = vst [vmem:[#allocation3 + $0x39] sm:$0xff] %v1378_v23  ;;  %1518 = vmatmul.f32.gmra.mxu2 %v1405_v24  ;;  %1480 = vmatmul.f32.gmra.mxu1 %v1378_v23 }
 0x1aa   : > { %v1282_v28 = vpop.f32.mrf.mxu2 }
 0x1ab   : > { %v1283_v30 = vadd.f32 %v1282_v28, %v1241_v29 }
 0x1ae   : > { %v1244_v36 = vpop.f32.mrf.mxu1 }
 0x1af   : > { %v1406_v25 = vld [vmem:[#allocation3 + $0x38] sm:$0xff] }
 0x1b0   : > { %v1535_v26 = vld [vmem:[#allocation3 + $0x32] sm:$0xff]  ;;  %1521 = vmatmul.f32.gmra.mxu2 %v1406_v25  ;;  %v1536_v27 = vld [vmem:[#allocation3 + $0x3a] sm:$0xff] }
 0x1b1   : > { %1583 = vmatmul.f32.gmra.mxu3 %v1535_v26 }
 0x1b9   : > { %1586 = vmatmul.f32.gmra.mxu3 %v1536_v27 }
 0x1bc   : > { %v1285_v21 = vpop.f32.mrf.mxu2 }
 0x1bd   : > { %v1347_v31 = vpop.f32.mrf.mxu3  ;;  %v1286_v37 = vadd.f32 %v1285_v21, %v1244_v36 }
 0x1be   : > { %v1359_v32 = vadd.f32 %v1347_v31, %v1283_v30 }
 0x1c0   : > { %v1371_v33 = vadd.f32 %v2644_v43, %v1359_v32 }
 0x1c2   : > { %v1379_v35 = vmax.f32 %v1371_v33, 0.0 }
 0x1c4   : > { %1399 = vst [vmem:[#allocation3 + $0x49] sm:$0xff] %v1379_v35  ;;  %1483 = vmatmul.f32.gmra.mxu1 %v1379_v35 }
 0x1c5   : > { %v1350_v41 = vpop.f32.mrf.mxu3 }
 0x1c6   : > { %v1360_v42 = vadd.f32 %v1350_v41, %v1286_v37 }
 0x1c8   : > { %v1372_v44 = vadd.f32 %v2644_v43, %v1360_v42 }
 0x1ca   : > { %v1380_v45 = vmax.f32 %v1372_v44, 0.0 }
 0x1cb   : > { %v1407_v46 = vld [vmem:[#allocation3 + $0x48] sm:$0xff] }
 0x1cc   : > { %1400 = vst [vmem:[#allocation3 + $0x51] sm:$0xff] %v1380_v45  ;;  %1524 = vmatmul.f32.gmra.mxu2 %v1407_v46  ;;  %1486 = vmatmul.f32.gmra.mxu1 %v1380_v45 }
 0x1d1   : > { %v1466_v49 = vpop.f32.mrf.mxu1 }
 0x1d3   : > { %v1408_v47 = vld [vmem:[#allocation3 + $0x50] sm:$0xff] }
 0x1d4   : > { %v1537_v39 = vld [vmem:[#allocation3 + $0x4a] sm:$0xff]  ;;  %1527 = vmatmul.f32.gmra.mxu2 %v1408_v47  ;;  %v1538_v48 = vld [vmem:[#allocation3 + $0x52] sm:$0xff] }
 0x1d5   : > { %1589 = vmatmul.f32.gmra.mxu3 %v1537_v39 }
 0x1d9   : > { %v1469_v55 = vpop.f32.mrf.mxu1 }
 0x1dd   : > { %1592 = vmatmul.f32.gmra.mxu3 %v1538_v48 }
 0x1df   : > { %v1507_v34 = vpop.f32.mrf.mxu2 }
 0x1e0   : > { %v1508_v50 = vadd.f32 %v1507_v34, %v1466_v49 }
 0x1e7   : > { %v1510_v53 = vpop.f32.mrf.mxu2 }
 0x1e8   : > { %v1572_v43 = vpop.f32.mrf.mxu3  ;;  %v1511_v57 = vadd.f32 %v1510_v53, %v1469_v55 }
 0x1e9   : > { %v1596_v52 = vadd.f32 %v1572_v43, %v1508_v50 }
 0x1eb   : > { %v1608_v54 = vadd.f32 %v2657_v51, %v1596_v52 }
 0x1ed   : > { %v1616_v56 = vmax.f32 %v1608_v54, 0.0 }
 0x1ef   : > { %v1632_v58 = vrot.slane %v1616_v56, 2  ;;  %v1633_v59 = vrot.slane %v1616_v56, 4  ;;  %v1634_v60 = vrot.slane %v1616_v56, 6  ;;  %v1680_v61 = vsel %vm554_vm2, %v1616_v56, -inf }
 0x1f0   : > { %v1681_v62 = vrot.slane %v1680_v61, 4  ;;  %v1575_v63 = vpop.f32.mrf.mxu3 }
 0x1f1   : > { %v1687_v0 = vsel %vm554_vm2, %v1632_v58, -inf  ;;  %v1694_v1 = vsel %vm554_vm2, %v1633_v59, -inf  ;;  %v1701_v2 = vsel %vm554_vm2, %v1634_v60, -inf  ;;  %v1597_v3 = vadd.f32 %v1575_v63, %v1511_v57 }
 0x1f2   : > { %v1682_v4 = vmax.f32 %v1680_v61, %v1681_v62  ;;  %v1688_v5 = vrot.slane %v1687_v0, 4  ;;  %v1695_v40 = vrot.slane %v1694_v1, 4  ;;  %v1702_v6 = vrot.slane %v1701_v2, 4 }
 0x1f3   : > { %v1609_v7 = vadd.f32 %v2657_v51, %v1597_v3 }
 0x1f4   : > { %v1683_v8 = vrot.slane %v1682_v4, 2  ;;  %v1689_v38 = vmax.f32 %v1687_v0, %v1688_v5  ;;  %v1696_v9 = vmax.f32 %v1694_v1, %v1695_v40  ;;  %v1703_v10 = vmax.f32 %v1701_v2, %v1702_v6 }
 0x1f5   : > { %v1617_v11 = vmax.f32 %v1609_v7, 0.0 }
 0x1f6   : > { %v1684_v12 = vmax.f32 %v1682_v4, %v1683_v8  ;;  %v1690_v13 = vrot.slane %v1689_v38, 2  ;;  %v1697_v14 = vrot.slane %v1696_v9, 2  ;;  %v1704_v15 = vrot.slane %v1703_v10, 2 }
 0x1f7   : > { %v1635_v17 = vrot.slane %v1617_v11, 2  ;;  %v1636_v18 = vrot.slane %v1617_v11, 4  ;;  %v1637_v19 = vrot.slane %v1617_v11, 6  ;;  %v1708_v20 = vsel %vm554_vm2, %v1617_v11, -inf }
 0x1f8   : > { %v1685_v16 = vrot.slane %v1684_v12, 1  ;;  %v1691_v22 = vmax.f32 %v1689_v38, %v1690_v13  ;;  %v1698_v23 = vmax.f32 %v1696_v9, %v1697_v14  ;;  %v1709_v24 = vrot.slane %v1708_v20, 4  ;;  %v1472_v5 = vpop.f32.mrf.mxu1 }
 0x1f9   : > { %v1715_v25 = vsel %vm554_vm2, %v1635_v17, -inf  ;;  %v1722_v26 = vsel %vm554_vm2, %v1636_v18, -inf  ;;  %v1729_v27 = vsel %vm554_vm2, %v1637_v19, -inf  ;;  %v1705_v30 = vmax.f32 %v1703_v10, %v1704_v15 }
 0x1fa   : > { %v1692_v28 = vrot.slane %v1691_v22, 1  ;;  %v1699_v29 = vrot.slane %v1698_v23, 1  ;;  %v1710_v31 = vmax.f32 %v1708_v20, %v1709_v24  ;;  %v1716_v32 = vrot.slane %v1715_v25, 4 }
 0x1fb   : > { %v1723_v33 = vrot.slane %v1722_v26, 4  ;;  %v1730_v21 = vrot.slane %v1729_v27, 4  ;;  %v1686_v35 = vmax.f32 %v1684_v12, %v1685_v16  ;;  %v1706_v46 = vrot.slane %v1705_v30, 1 }
 0x1fc   : > { %v1693_v36 = vmax.f32 %v1691_v22, %v1692_v28  ;;  %v1700_v37 = vmax.f32 %v1698_v23, %v1699_v29  ;;  %v1711_v41 = vrot.slane %v1710_v31, 2  ;;  %v1717_v42 = vmax.f32 %v1715_v25, %v1716_v32 }
 0x1fd   : > { %v1724_v44 = vmax.f32 %v1722_v26, %v1723_v33  ;;  %v1731_v45 = vmax.f32 %v1729_v27, %v1730_v21  ;;  %v1707_v54 = vmax.f32 %v1705_v30, %v1706_v46 }
 0x1fe   : > { %v1936_v47 = vsel %vm1079_vm3, %v1693_v36, %v1686_v35  ;;  %v1712_v39 = vmax.f32 %v1710_v31, %v1711_v41  ;;  %v1718_v48 = vrot.slane %v1717_v42, 2 }
 0x1ff   : > { %v1725_v34 = vrot.slane %v1724_v44, 2  ;;  %v1732_v49 = vrot.slane %v1731_v45, 2  ;;  %v1937_v50 = vsel %vm1081_vm4, %v1700_v37, %v1936_v47 }
 0x200   : > { %v1713_v43 = vrot.slane %v1712_v39, 1  ;;  %v1719_v52 = vmax.f32 %v1717_v42, %v1718_v48  ;;  %v1938_v59 = vsel %vm1083_vm5, %v1707_v54, %v1937_v50  ;;  %v1475_v9 = vpop.f32.mrf.mxu1 }
 0x201   : > { %v1726_v53 = vmax.f32 %v1724_v44, %v1725_v34  ;;  %v1733_v55 = vmax.f32 %v1731_v45, %v1732_v49 }
 0x202   : > { %v1714_v56 = vmax.f32 %v1712_v39, %v1713_v43  ;;  %v1720_v57 = vrot.slane %v1719_v52, 1 }
 0x203   : > { %v1727_v58 = vrot.slane %v1726_v53, 1  ;;  %v1734_v60 = vrot.slane %v1733_v55, 1 }
 0x204   : > { %v1721_v61 = vmax.f32 %v1719_v52, %v1720_v57  ;;  %v1939_v63 = vsel %vm1085_vm6, %v1714_v56, %v1938_v59 }
 0x205   : > { %v1728_v62 = vmax.f32 %v1726_v53, %v1727_v58  ;;  %v1735_v0 = vmax.f32 %v1733_v55, %v1734_v60 }
 0x206   : > { %v1940_v1 = vsel %vm1087_vm7, %v1721_v61, %v1939_v63  ;;  %v1513_v3 = vpop.f32.mrf.mxu2 }
 0x207   : > { %v1941_v2 = vsel %vm1089_vm8, %v1728_v62, %v1940_v1  ;;  %v1514_v40 = vadd.f32 %v1513_v3, %v1472_v5 }
 0x208   : > { %v1942_v4 = vsel %vm1091_vm9, %v1735_v0, %v1941_v2 }
 0x209   : > { %1968 = vst [vmem:[%s2677_s8] sm:$0xff] %v1942_v4 }
 0x20e   : > { %v1516_v8 = vpop.f32.mrf.mxu2 }
 0x20f   : > { %v1578_v6 = vpop.f32.mrf.mxu3  ;;  %v1517_v11 = vadd.f32 %v1516_v8, %v1475_v9 }
 0x210   : > { %v1598_v7 = vadd.f32 %v1578_v6, %v1514_v40 }
 0x212   : > { %v1610_v38 = vadd.f32 %v2657_v51, %v1598_v7 }
 0x214   : > { %v1618_v10 = vmax.f32 %v1610_v38, 0.0 }
 0x216   : > { %v1638_v12 = vrot.slane %v1618_v10, 2  ;;  %v1639_v13 = vrot.slane %v1618_v10, 4  ;;  %v1640_v14 = vrot.slane %v1618_v10, 6  ;;  %v1736_v15 = vsel %vm554_vm2, %v1618_v10, -inf }
 0x217   : > { %v1737_v17 = vrot.slane %v1736_v15, 4  ;;  %v1581_v18 = vpop.f32.mrf.mxu3 }
 0x218   : > { %v1743_v19 = vsel %vm554_vm2, %v1638_v12, -inf  ;;  %v1750_v20 = vsel %vm554_vm2, %v1639_v13, -inf  ;;  %v1757_v16 = vsel %vm554_vm2, %v1640_v14, -inf  ;;  %v1599_v22 = vadd.f32 %v1581_v18, %v1517_v11 }
 0x219   : > { %v1738_v23 = vmax.f32 %v1736_v15, %v1737_v17  ;;  %v1744_v24 = vrot.slane %v1743_v19, 4  ;;  %v1751_v25 = vrot.slane %v1750_v20, 4  ;;  %v1758_v26 = vrot.slane %v1757_v16, 4 }
 0x21a   : > { %v1611_v27 = vadd.f32 %v2657_v51, %v1599_v22 }
 0x21b   : > { %v1739_v28 = vrot.slane %v1738_v23, 2  ;;  %v1745_v29 = vmax.f32 %v1743_v19, %v1744_v24  ;;  %v1752_v30 = vmax.f32 %v1750_v20, %v1751_v25  ;;  %v1759_v31 = vmax.f32 %v1757_v16, %v1758_v26 }
 0x21c   : > { %v1619_v32 = vmax.f32 %v1611_v27, 0.0 }
 0x21d   : > { %v1740_v33 = vmax.f32 %v1738_v23, %v1739_v28  ;;  %v1746_v21 = vrot.slane %v1745_v29, 2  ;;  %v1753_v35 = vrot.slane %v1752_v30, 2  ;;  %v1760_v36 = vrot.slane %v1759_v31, 2  ;;  %v1478_v23 = vpop.f32.mrf.mxu1 }
 0x21e   : > { %v1641_v37 = vrot.slane %v1619_v32, 2  ;;  %v1642_v41 = vrot.slane %v1619_v32, 4  ;;  %v1643_v42 = vrot.slane %v1619_v32, 6  ;;  %v1764_v44 = vsel %vm554_vm2, %v1619_v32, -inf }
 0x21f   : > { %v1741_v45 = vrot.slane %v1740_v33, 1  ;;  %v1747_v46 = vmax.f32 %v1745_v29, %v1746_v21  ;;  %v1754_v47 = vmax.f32 %v1752_v30, %v1753_v35  ;;  %v1765_v39 = vrot.slane %v1764_v44, 4 }
 0x220   : > { %v1771_v48 = vsel %vm554_vm2, %v1641_v37, -inf  ;;  %v1778_v34 = vsel %vm554_vm2, %v1642_v41, -inf  ;;  %v1785_v49 = vsel %vm554_vm2, %v1643_v42, -inf  ;;  %v1761_v52 = vmax.f32 %v1759_v31, %v1760_v36 }
 0x221   : > { %v1748_v50 = vrot.slane %v1747_v46, 1  ;;  %v1755_v43 = vrot.slane %v1754_v47, 1  ;;  %v1766_v53 = vmax.f32 %v1764_v44, %v1765_v39  ;;  %v1772_v54 = vrot.slane %v1771_v48, 4 }
 0x222   : > { %v1779_v55 = vrot.slane %v1778_v34, 4  ;;  %v1786_v56 = vrot.slane %v1785_v49, 4  ;;  %v1742_v57 = vmax.f32 %v1740_v33, %v1741_v45  ;;  %v1762_v0 = vrot.slane %v1761_v52, 1 }
 0x223   : > { %v1749_v58 = vmax.f32 %v1747_v46, %v1748_v50  ;;  %v1756_v59 = vmax.f32 %v1754_v47, %v1755_v43  ;;  %v1767_v60 = vrot.slane %v1766_v53, 2  ;;  %v1773_v61 = vmax.f32 %v1771_v48, %v1772_v54 }
 0x224   : > { %v1780_v62 = vmax.f32 %v1778_v34, %v1779_v55  ;;  %v1787_v63 = vmax.f32 %v1785_v49, %v1786_v56  ;;  %v1763_v38 = vmax.f32 %v1761_v52, %v1762_v0 }
 0x225   : > { %v1943_v1 = vsel %vm1079_vm3, %v1749_v58, %v1742_v57  ;;  %v1768_v2 = vmax.f32 %v1766_v53, %v1767_v60  ;;  %v1774_v3 = vrot.slane %v1773_v61, 2  ;;  %v1481_v30 = vpop.f32.mrf.mxu1 }
 0x226   : > { %v1781_v4 = vrot.slane %v1780_v62, 2  ;;  %v1788_v5 = vrot.slane %v1787_v63, 2  ;;  %v1944_v40 = vsel %vm1081_vm4, %v1756_v59, %v1943_v1 }
 0x227   : > { %v1769_v6 = vrot.slane %v1768_v2, 1  ;;  %v1775_v7 = vmax.f32 %v1773_v61, %v1774_v3  ;;  %v1945_v13 = vsel %vm1083_vm5, %v1763_v38, %v1944_v40 }
 0x228   : > { %v1782_v8 = vmax.f32 %v1780_v62, %v1781_v4  ;;  %v1789_v9 = vmax.f32 %v1787_v63, %v1788_v5 }
 0x229   : > { %v1770_v10 = vmax.f32 %v1768_v2, %v1769_v6  ;;  %v1776_v11 = vrot.slane %v1775_v7, 1 }
 0x22a   : > { %v1783_v12 = vrot.slane %v1782_v8, 1  ;;  %v1790_v14 = vrot.slane %v1789_v9, 1 }
 0x22b   : > { %v1777_v15 = vmax.f32 %v1775_v7, %v1776_v11  ;;  %v1946_v18 = vsel %vm1085_vm6, %v1770_v10, %v1945_v13  ;;  %v1519_v19 = vpop.f32.mrf.mxu2 }
 0x22c   : > { %v1784_v17 = vmax.f32 %v1782_v8, %v1783_v12  ;;  %v1791_v20 = vmax.f32 %v1789_v9, %v1790_v14  ;;  %v1520_v25 = vadd.f32 %v1519_v19, %v1478_v23 }
 0x22d   : > { %v1947_v16 = vsel %vm1087_vm7, %v1777_v15, %v1946_v18 }
 0x22e   : > { %v1948_v22 = vsel %vm1089_vm8, %v1784_v17, %v1947_v16 }
 0x22f   : > { %v1949_v24 = vsel %vm1091_vm9, %v1791_v20, %v1948_v22 }
 0x230   : > { %1969 = vst [vmem:[%s2677_s8 + $0x8] sm:$0xff] %v1949_v24 }
 0x233   : > { %v1522_v28 = vpop.f32.mrf.mxu2 }
 0x234   : > { %v1584_v26 = vpop.f32.mrf.mxu3  ;;  %v1523_v32 = vadd.f32 %v1522_v28, %v1481_v30 }
 0x235   : > { %v1600_v27 = vadd.f32 %v1584_v26, %v1520_v25 }
 0x237   : > { %v1612_v29 = vadd.f32 %v2657_v51, %v1600_v27 }
 0x239   : > { %v1620_v31 = vmax.f32 %v1612_v29, 0.0 }
 0x23b   : > { %v1644_v33 = vrot.slane %v1620_v31, 2  ;;  %v1645_v21 = vrot.slane %v1620_v31, 4  ;;  %v1646_v35 = vrot.slane %v1620_v31, 6  ;;  %v1792_v36 = vsel %vm554_vm2, %v1620_v31, -inf }
 0x23c   : > { %v1793_v37 = vrot.slane %v1792_v36, 4  ;;  %v1587_v41 = vpop.f32.mrf.mxu3 }
 0x23d   : > { %v1799_v42 = vsel %vm554_vm2, %v1644_v33, -inf  ;;  %v1806_v44 = vsel %vm554_vm2, %v1645_v21, -inf  ;;  %v1813_v45 = vsel %vm554_vm2, %v1646_v35, -inf  ;;  %v1601_v46 = vadd.f32 %v1587_v41, %v1523_v32 }
 0x23e   : > { %v1794_v47 = vmax.f32 %v1792_v36, %v1793_v37  ;;  %v1800_v39 = vrot.slane %v1799_v42, 4  ;;  %v1807_v48 = vrot.slane %v1806_v44, 4  ;;  %v1814_v34 = vrot.slane %v1813_v45, 4 }
 0x23f   : > { %v1613_v49 = vadd.f32 %v2657_v51, %v1601_v46 }
 0x240   : > { %v1795_v50 = vrot.slane %v1794_v47, 2  ;;  %v1801_v43 = vmax.f32 %v1799_v42, %v1800_v39  ;;  %v1808_v52 = vmax.f32 %v1806_v44, %v1807_v48  ;;  %v1815_v53 = vmax.f32 %v1813_v45, %v1814_v34 }
 0x241   : > { %v1621_v54 = vmax.f32 %v1613_v49, 0.0 }
 0x242   : > { %v1796_v55 = vmax.f32 %v1794_v47, %v1795_v50  ;;  %v1802_v56 = vrot.slane %v1801_v43, 2  ;;  %v1809_v57 = vrot.slane %v1808_v52, 2  ;;  %v1816_v58 = vrot.slane %v1815_v53, 2  ;;  %v1484_v47 = vpop.f32.mrf.mxu1 }
 0x243   : > { %v1647_v59 = vrot.slane %v1621_v54, 2  ;;  %v1648_v60 = vrot.slane %v1621_v54, 4  ;;  %v1649_v61 = vrot.slane %v1621_v54, 6  ;;  %v1820_v62 = vsel %vm554_vm2, %v1621_v54, -inf }
 0x244   : > { %v1797_v63 = vrot.slane %v1796_v55, 1  ;;  %v1803_v0 = vmax.f32 %v1801_v43, %v1802_v56  ;;  %v1810_v1 = vmax.f32 %v1808_v52, %v1809_v57  ;;  %v1821_v2 = vrot.slane %v1820_v62, 4 }
 0x245   : > { %v1827_v3 = vsel %vm554_vm2, %v1647_v59, -inf  ;;  %v1834_v4 = vsel %vm554_vm2, %v1648_v60, -inf  ;;  %v1841_v5 = vsel %vm554_vm2, %v1649_v61, -inf  ;;  %v1817_v7 = vmax.f32 %v1815_v53, %v1816_v58 }
 0x246   : > { %v1804_v40 = vrot.slane %v1803_v0, 1  ;;  %v1811_v6 = vrot.slane %v1810_v1, 1  ;;  %v1822_v8 = vmax.f32 %v1820_v62, %v1821_v2  ;;  %v1828_v38 = vrot.slane %v1827_v3, 4 }
 0x247   : > { %v1835_v9 = vrot.slane %v1834_v4, 4  ;;  %v1842_v10 = vrot.slane %v1841_v5, 4  ;;  %v1798_v11 = vmax.f32 %v1796_v55, %v1797_v63  ;;  %v1818_v19 = vrot.slane %v1817_v7, 1 }
 0x248   : > { %v1805_v12 = vmax.f32 %v1803_v0, %v1804_v40  ;;  %v1812_v13 = vmax.f32 %v1810_v1, %v1811_v6  ;;  %v1823_v14 = vrot.slane %v1822_v8, 2  ;;  %v1829_v15 = vmax.f32 %v1827_v3, %v1828_v38 }
 0x249   : > { %v1836_v17 = vmax.f32 %v1834_v4, %v1835_v9  ;;  %v1843_v18 = vmax.f32 %v1841_v5, %v1842_v10  ;;  %v1819_v29 = vmax.f32 %v1817_v7, %v1818_v19 }
 0x24a   : > { %v1950_v20 = vsel %vm1079_vm3, %v1805_v12, %v1798_v11  ;;  %v1824_v16 = vmax.f32 %v1822_v8, %v1823_v14  ;;  %v1830_v22 = vrot.slane %v1829_v15, 2  ;;  %v1487_v52 = vpop.f32.mrf.mxu1 }
 0x24b   : > { %v1837_v23 = vrot.slane %v1836_v17, 2  ;;  %v1844_v24 = vrot.slane %v1843_v18, 2  ;;  %v1951_v25 = vsel %vm1081_vm4, %v1812_v13, %v1950_v20 }
 0x24c   : > { %v1825_v26 = vrot.slane %v1824_v16, 1  ;;  %v1831_v27 = vmax.f32 %v1829_v15, %v1830_v22  ;;  %v1952_v21 = vsel %vm1083_vm5, %v1819_v29, %v1951_v25 }
 0x24d   : > { %v1838_v28 = vmax.f32 %v1836_v17, %v1837_v23  ;;  %v1845_v30 = vmax.f32 %v1843_v18, %v1844_v24 }
 0x24e   : > { %v1826_v31 = vmax.f32 %v1824_v16, %v1825_v26  ;;  %v1832_v32 = vrot.slane %v1831_v27, 1 }
 0x24f   : > { %v1839_v33 = vrot.slane %v1838_v28, 1  ;;  %v1846_v35 = vrot.slane %v1845_v30, 1  ;;  %v1525_v42 = vpop.f32.mrf.mxu2 }
 0x250   : > { %v1833_v36 = vmax.f32 %v1831_v27, %v1832_v32  ;;  %v1953_v41 = vsel %vm1085_vm6, %v1826_v31, %v1952_v21  ;;  %v1526_v48 = vadd.f32 %v1525_v42, %v1484_v47 }
 0x251   : > { %v1840_v37 = vmax.f32 %v1838_v28, %v1839_v33  ;;  %v1847_v44 = vmax.f32 %v1845_v30, %v1846_v35 }
 0x252   : > { %v1954_v45 = vsel %vm1087_vm7, %v1833_v36, %v1953_v41 }
 0x253   : > { %v1955_v46 = vsel %vm1089_vm8, %v1840_v37, %v1954_v45 }
 0x254   : > { %v1956_v39 = vsel %vm1091_vm9, %v1847_v44, %v1955_v46 }
 0x255   : > { %1970 = vst [vmem:[%s2677_s8 + $0x10] sm:$0xff] %v1956_v39 }
 0x257   : > { %v1528_v50 = vpop.f32.mrf.mxu2 }
 0x258   : > { %v1590_v34 = vpop.f32.mrf.mxu3  ;;  %v1529_v54 = vadd.f32 %v1528_v50, %v1487_v52 }
 0x259   : > { %v1602_v49 = vadd.f32 %v1590_v34, %v1526_v48 }
 0x25b   : > { %v1614_v43 = vadd.f32 %v2657_v51, %v1602_v49 }
 0x25d   : > { %v1622_v53 = vmax.f32 %v1614_v43, 0.0 }
 0x25f   : > { %v1650_v55 = vrot.slane %v1622_v53, 2  ;;  %v1651_v56 = vrot.slane %v1622_v53, 4  ;;  %v1652_v57 = vrot.slane %v1622_v53, 6  ;;  %v1848_v58 = vsel %vm554_vm2, %v1622_v53, -inf }
 0x260   : > { %v1849_v59 = vrot.slane %v1848_v58, 4  ;;  %v1593_v60 = vpop.f32.mrf.mxu3 }
 0x261   : > { %v1855_v61 = vsel %vm554_vm2, %v1650_v55, -inf  ;;  %v1862_v62 = vsel %vm554_vm2, %v1651_v56, -inf  ;;  %v1869_v63 = vsel %vm554_vm2, %v1652_v57, -inf  ;;  %v1603_v0 = vadd.f32 %v1593_v60, %v1529_v54 }
 0x262   : > { %v1850_v1 = vmax.f32 %v1848_v58, %v1849_v59  ;;  %v1856_v2 = vrot.slane %v1855_v61, 4  ;;  %v1863_v3 = vrot.slane %v1862_v62, 4  ;;  %v1870_v4 = vrot.slane %v1869_v63, 4 }
 0x263   : > { %v1615_v5 = vadd.f32 %v2657_v51, %v1603_v0 }
 0x264   : > { %v1851_v40 = vrot.slane %v1850_v1, 2  ;;  %v1857_v6 = vmax.f32 %v1855_v61, %v1856_v2  ;;  %v1864_v7 = vmax.f32 %v1862_v62, %v1863_v3  ;;  %v1871_v8 = vmax.f32 %v1869_v63, %v1870_v4 }
 0x265   : > { %v1623_v38 = vmax.f32 %v1615_v5, 0.0 }
 0x266   : > { %v1852_v9 = vmax.f32 %v1850_v1, %v1851_v40  ;;  %v1858_v10 = vrot.slane %v1857_v6, 2  ;;  %v1865_v11 = vrot.slane %v1864_v7, 2  ;;  %v1872_v12 = vrot.slane %v1871_v8, 2 }
 0x267   : > { %v1653_v13 = vrot.slane %v1623_v38, 2  ;;  %v1654_v14 = vrot.slane %v1623_v38, 4  ;;  %v1655_v15 = vrot.slane %v1623_v38, 6  ;;  %v1876_v17 = vsel %vm554_vm2, %v1623_v38, -inf }
 0x268   : > { %v1853_v18 = vrot.slane %v1852_v9, 1  ;;  %v1859_v19 = vmax.f32 %v1857_v6, %v1858_v10  ;;  %v1866_v20 = vmax.f32 %v1864_v7, %v1865_v11  ;;  %v1877_v16 = vrot.slane %v1876_v17, 4 }
 0x269   : > { %v1883_v51 = vsel %vm554_vm2, %v1653_v13, -inf  ;;  %v1890_v22 = vsel %vm554_vm2, %v1654_v14, -inf  ;;  %v1897_v23 = vsel %vm554_vm2, %v1655_v15, -inf  ;;  %v1873_v26 = vmax.f32 %v1871_v8, %v1872_v12 }
 0x26a   : > { %v1860_v24 = vrot.slane %v1859_v19, 1  ;;  %v1867_v25 = vrot.slane %v1866_v20, 1  ;;  %v1878_v27 = vmax.f32 %v1876_v17, %v1877_v16  ;;  %v1884_v28 = vrot.slane %v1883_v51, 4 }
 0x26b   : > { %v1891_v29 = vrot.slane %v1890_v22, 4  ;;  %v1898_v30 = vrot.slane %v1897_v23, 4  ;;  %v1854_v31 = vmax.f32 %v1852_v9, %v1853_v18  ;;  %v1874_v41 = vrot.slane %v1873_v26, 1 }
 0x26c   : > { %v1861_v32 = vmax.f32 %v1859_v19, %v1860_v24  ;;  %v1868_v33 = vmax.f32 %v1866_v20, %v1867_v25  ;;  %v1879_v21 = vrot.slane %v1878_v27, 2  ;;  %v1885_v35 = vmax.f32 %v1883_v51, %v1884_v28 }
 0x26d   : > { %v1892_v36 = vmax.f32 %v1890_v22, %v1891_v29  ;;  %v1899_v37 = vmax.f32 %v1897_v23, %v1898_v30  ;;  %v1875_v50 = vmax.f32 %v1873_v26, %v1874_v41 }
 0x26e   : > { %v1957_v42 = vsel %vm1079_vm3, %v1861_v32, %v1854_v31  ;;  %v1880_v44 = vmax.f32 %v1878_v27, %v1879_v21  ;;  %v1886_v45 = vrot.slane %v1885_v35, 2 }
 0x26f   : > { %v1893_v46 = vrot.slane %v1892_v36, 2  ;;  %v1900_v47 = vrot.slane %v1899_v37, 2  ;;  %v1958_v39 = vsel %vm1081_vm4, %v1868_v33, %v1957_v42 }
 0x270   : > { %v1881_v48 = vrot.slane %v1880_v44, 1  ;;  %v1887_v34 = vmax.f32 %v1885_v35, %v1886_v45  ;;  %v1959_v55 = vsel %vm1083_vm5, %v1875_v50, %v1958_v39 }
 0x271   : > { %v1894_v49 = vmax.f32 %v1892_v36, %v1893_v46  ;;  %v1901_v43 = vmax.f32 %v1899_v37, %v1900_v47 }
 0x272   : > { %v1882_v52 = vmax.f32 %v1880_v44, %v1881_v48  ;;  %v1888_v53 = vrot.slane %v1887_v34, 1 }
 0x273   : > { %v1895_v54 = vrot.slane %v1894_v49, 1  ;;  %v1902_v56 = vrot.slane %v1901_v43, 1 }
 0x274   : > { %v1889_v57 = vmax.f32 %v1887_v34, %v1888_v53  ;;  %v1960_v59 = vsel %vm1085_vm6, %v1882_v52, %v1959_v55 }
 0x275   : > { %v1896_v58 = vmax.f32 %v1894_v49, %v1895_v54  ;;  %v1903_v60 = vmax.f32 %v1901_v43, %v1902_v56 }
 0x276   : > { %v1961_v61 = vsel %vm1087_vm7, %v1889_v57, %v1960_v59 }
 0x277   : > { %v1962_v62 = vsel %vm1089_vm8, %v1896_v58, %v1961_v61 }
 0x278   : > { %v1963_v63 = vsel %vm1091_vm9, %v1903_v60, %v1962_v62 }
 0x279   : > { %1971 = vst [vmem:[%s2677_s8 + $0x18] sm:$0xff] %v1963_v63 }
 0x27a PF: > { %s17_s24 = sadd.s32 1, %s2077_s24  }
 0x27b   : > { %p14_p4 = scmp.ge.s32.totalorder %s17_s24, 4  }
 0x27d   :  { %16 = sbr.rel (!%p14_p4) target bundleno = 1 (0x1), region = 78 }

</bundles_post_ra>
